<compile_context>
chip_gen: v7x
topology: tpu7x:2x2x1
jax: 0.10.0
libtpu: 0.0.40
codegen_flags: <defaults>
</compile_context>

<pallas_src>
import functools

import jax
import jax.numpy as jnp
from jax import lax
from jax.experimental import pallas as pl
from jax.experimental.pallas import tpu as pltpu


def _conv2d_kernel(x_ref, w_ref, b_ref, o_ref, *, width, kh_sz, kw_sz):
    # x_ref : (N, C, HWP)       flattened (row-major), zero-padded images
    # w_ref : (OC, C*KH*KW)     weights, term order t = c*(KH*KW) + kh*KW + kw
    # b_ref : (OC, 1)           bias
    # o_ref : (N, OC, OHW_PAD)  expanded, lane-aligned output (cols >= OH*W are garbage)
    n_b, c_in, _ = x_ref.shape
    _, oc, ohw_pad = o_ref.shape

    # Load weights / bias into registers once (no per-term VMEM column loads).
    w_all = w_ref[...]                                   # (OC, C*KH*KW): a single vreg
    bias = b_ref[...]                                    # (OC, 1)

    # Register accumulator, seeded with the bias (saves the epilogue add).
    acc = jnp.broadcast_to(bias[None, :, :], (n_b, oc, ohw_pad)).astype(jnp.float32)

    t = 0
    for c in range(c_in):
        for kh in range(kh_sz):
            # One contiguous lane slice per (c, kh): element i of this slice is
            # x[n, c, flat_index = kh*W + i], for all batch elements at once.
            start = kh * width
            base = x_ref[:, c:c + 1, start:start + ohw_pad]   # (N, 1, OHW_PAD)
            for kw in range(kw_sz):
                if kw == 0:
                    xs = base
                else:
                    # xs[..., i] = base[..., i + kw] via an XLU rotate; the
                    # wrapped tail only lands in columns >= OHW_PAD - kw, which
                    # are garbage columns dropped by the wrapper.
                    xs = pltpu.roll(base, ohw_pad - kw, axis=2)
                wt = w_all[:, t:t + 1]                        # (OC, 1) register slice
                # (1, OC, 1) * (N, 1, OHW_PAD) -> (N, OC, OHW_PAD) broadcast FMA (VPU).
                acc = acc + wt[None, :, :] * xs
                t += 1

    o_ref[...] = acc.astype(o_ref.dtype)


@jax.jit
def conv2d_pallas(x_nchw, w_oihw, bias):
    """Valid KHxKW conv, stride 1, no padding.  Inputs/outputs in PyTorch NCHW/OIHW."""
    N, C, H, W = x_nchw.shape
    OC, _, KH, KW = w_oihw.shape
    OH, OW = H - KH + 1, W - KW + 1

    OHW = OH * W                                   # valid flat output length per channel
    OHW_PAD = ((OHW + 127) // 128) * 128           # lane-aligned store width (224 -> 256)
    # Flat image length so every (c, kh) base slice stays in bounds.
    need = (KH - 1) * W + OHW_PAD
    HWP = ((max(need, H * W) + 127) // 128) * 128

    x_flat = x_nchw.reshape(N, C, H * W)           # free (contiguous) reshape
    x_flat = jnp.pad(x_flat, ((0, 0), (0, 0), (0, HWP - H * W)))
    w_flat = w_oihw.reshape(OC, C * KH * KW)       # t = c*KH*KW + kh*KW + kw
    b2 = bias.reshape(OC, 1)

    kernel = functools.partial(_conv2d_kernel, width=W, kh_sz=KH, kw_sz=KW)

    out_exp = pl.pallas_call(
        kernel,
        out_shape=jax.ShapeDtypeStruct((N, OC, OHW_PAD), x_nchw.dtype),
        in_specs=[
            pl.BlockSpec(memory_space=pltpu.MemorySpace.VMEM),   # whole batch resident
            pl.BlockSpec(memory_space=pltpu.MemorySpace.VMEM),   # weights
            pl.BlockSpec(memory_space=pltpu.MemorySpace.VMEM),   # bias
        ],
        out_specs=pl.BlockSpec(memory_space=pltpu.MemorySpace.VMEM),
    )(x_flat, w_flat, b2)

    # (N, OC, OHW_PAD) -> keep valid flat columns -> (N, OC, OH, W) -> drop ow >= OW.
    return out_exp[:, :, :OHW].reshape(N, OC, OH, W)[:, :, :, :OW]


if __name__ == "__main__":
    key = jax.random.PRNGKey(0)
    kx, kw_key, kb = jax.random.split(key, 3)

    # Shapes implied by the module: batch=2, C_in=3, 16x16 spatial, Conv2d(3, 6, 3).
    x = jax.random.normal(kx, (2, 3, 16, 16), dtype=jnp.float32)
    w = jax.random.normal(kw_key, (6, 3, 3, 3), dtype=jnp.float32) * 0.1   # OIHW
    b = jax.random.normal(kb, (6,), dtype=jnp.float32) * 0.1

    out = conv2d_pallas(x, w, b)
    out = jax.block_until_ready(out)

    # Cross-check against XLA's conv (same semantics as torch.nn.Conv2d valid conv).
    ref = lax.conv_general_dilated(
        x, w, window_strides=(1, 1), padding="VALID",
        dimension_numbers=("NCHW", "OIHW", "NCHW")) + b[None, :, None, None]
    assert out.shape == (2, 6, 14, 14), out.shape
    assert jnp.allclose(out, ref, atol=1e-4, rtol=1e-4), "mismatch vs reference conv"

    print("KERNEL_OK")
</pallas_src>

<mosaic_0001>
module attributes {stable_mosaic.version = 11 : i64} {
  func.func @_conv2d_kernel(%arg0: memref<2x3x384xf32, #tpu.memory_space<vmem>>, %arg1: memref<6x27xf32, #tpu.memory_space<vmem>>, %arg2: memref<6x1xf32, #tpu.memory_space<vmem>>, %arg3: memref<2x6x256xf32, #tpu.memory_space<vmem>>) attributes {dimension_semantics = [], scalar_prefetch = 0 : i64, scratch_operands = 0 : i64, tpu.core_type = #tpu.core_type<tc>} {
    %c0 = arith.constant 0 : index
    %c0_0 = arith.constant 0 : index
    %0 = vector.load %arg1[%c0, %c0_0] : memref<6x27xf32, #tpu.memory_space<vmem>>, vector<6x27xf32>
    %c0_1 = arith.constant 0 : index
    %c0_2 = arith.constant 0 : index
    %1 = vector.load %arg2[%c0_1, %c0_2] : memref<6x1xf32, #tpu.memory_space<vmem>>, vector<6x1xf32>
    %2 = vector.shape_cast %1 : vector<6x1xf32> to vector<1x6x1xf32>
    %3 = vector.shape_cast %2 : vector<1x6x1xf32> to vector<1x6x1xf32>
    %4 = vector.broadcast %3 : vector<1x6x1xf32> to vector<2x6x256xf32>
    %c0_3 = arith.constant 0 : index
    %c0_4 = arith.constant 0 : index
    %c0_5 = arith.constant 0 : index
    %5 = vector.load %arg0[%c0_3, %c0_4, %c0_5] : memref<2x3x384xf32, #tpu.memory_space<vmem>>, vector<2x1x256xf32>
    %6 = vector.extract_strided_slice %0 {offsets = [0, 0], sizes = [6, 1], strides = [1, 1]} : vector<6x27xf32> to vector<6x1xf32>
    %7 = vector.shape_cast %6 : vector<6x1xf32> to vector<1x6x1xf32>
    %8 = vector.broadcast %7 : vector<1x6x1xf32> to vector<2x6x256xf32>
    %9 = vector.broadcast %5 : vector<2x1x256xf32> to vector<2x6x256xf32>
    %10 = arith.mulf %8, %9 : vector<2x6x256xf32>
    %11 = arith.addf %4, %10 : vector<2x6x256xf32>
    %c255_i32 = arith.constant 255 : i32
    %12 = tpu.dynamic_rotate %5 by %c255_i32 dim 2 : vector<2x1x256xf32>, i32 -> vector<2x1x256xf32>
    %13 = vector.extract_strided_slice %0 {offsets = [0, 1], sizes = [6, 1], strides = [1, 1]} : vector<6x27xf32> to vector<6x1xf32>
    %14 = vector.shape_cast %13 : vector<6x1xf32> to vector<1x6x1xf32>
    %15 = vector.broadcast %14 : vector<1x6x1xf32> to vector<2x6x256xf32>
    %16 = vector.broadcast %12 : vector<2x1x256xf32> to vector<2x6x256xf32>
    %17 = arith.mulf %15, %16 : vector<2x6x256xf32>
    %18 = arith.addf %11, %17 : vector<2x6x256xf32>
    %c254_i32 = arith.constant 254 : i32
    %19 = tpu.dynamic_rotate %5 by %c254_i32 dim 2 : vector<2x1x256xf32>, i32 -> vector<2x1x256xf32>
    %20 = vector.extract_strided_slice %0 {offsets = [0, 2], sizes = [6, 1], strides = [1, 1]} : vector<6x27xf32> to vector<6x1xf32>
    %21 = vector.shape_cast %20 : vector<6x1xf32> to vector<1x6x1xf32>
    %22 = vector.broadcast %21 : vector<1x6x1xf32> to vector<2x6x256xf32>
    %23 = vector.broadcast %19 : vector<2x1x256xf32> to vector<2x6x256xf32>
    %24 = arith.mulf %22, %23 : vector<2x6x256xf32>
    %25 = arith.addf %18, %24 : vector<2x6x256xf32>
    %c0_6 = arith.constant 0 : index
    %c0_7 = arith.constant 0 : index
    %c16 = arith.constant 16 : index
    %26 = vector.load %arg0[%c0_6, %c0_7, %c16] : memref<2x3x384xf32, #tpu.memory_space<vmem>>, vector<2x1x256xf32>
    %27 = vector.extract_strided_slice %0 {offsets = [0, 3], sizes = [6, 1], strides = [1, 1]} : vector<6x27xf32> to vector<6x1xf32>
    %28 = vector.shape_cast %27 : vector<6x1xf32> to vector<1x6x1xf32>
    %29 = vector.broadcast %28 : vector<1x6x1xf32> to vector<2x6x256xf32>
    %30 = vector.broadcast %26 : vector<2x1x256xf32> to vector<2x6x256xf32>
    %31 = arith.mulf %29, %30 : vector<2x6x256xf32>
    %32 = arith.addf %25, %31 : vector<2x6x256xf32>
    %c255_i32_8 = arith.constant 255 : i32
    %33 = tpu.dynamic_rotate %26 by %c255_i32_8 dim 2 : vector<2x1x256xf32>, i32 -> vector<2x1x256xf32>
    %34 = vector.extract_strided_slice %0 {offsets = [0, 4], sizes = [6, 1], strides = [1, 1]} : vector<6x27xf32> to vector<6x1xf32>
    %35 = vector.shape_cast %34 : vector<6x1xf32> to vector<1x6x1xf32>
    %36 = vector.broadcast %35 : vector<1x6x1xf32> to vector<2x6x256xf32>
    %37 = vector.broadcast %33 : vector<2x1x256xf32> to vector<2x6x256xf32>
    %38 = arith.mulf %36, %37 : vector<2x6x256xf32>
    %39 = arith.addf %32, %38 : vector<2x6x256xf32>
    %c254_i32_9 = arith.constant 254 : i32
    %40 = tpu.dynamic_rotate %26 by %c254_i32_9 dim 2 : vector<2x1x256xf32>, i32 -> vector<2x1x256xf32>
    %41 = vector.extract_strided_slice %0 {offsets = [0, 5], sizes = [6, 1], strides = [1, 1]} : vector<6x27xf32> to vector<6x1xf32>
    %42 = vector.shape_cast %41 : vector<6x1xf32> to vector<1x6x1xf32>
    %43 = vector.broadcast %42 : vector<1x6x1xf32> to vector<2x6x256xf32>
    %44 = vector.broadcast %40 : vector<2x1x256xf32> to vector<2x6x256xf32>
    %45 = arith.mulf %43, %44 : vector<2x6x256xf32>
    %46 = arith.addf %39, %45 : vector<2x6x256xf32>
    %c0_10 = arith.constant 0 : index
    %c0_11 = arith.constant 0 : index
    %c32 = arith.constant 32 : index
    %47 = vector.load %arg0[%c0_10, %c0_11, %c32] : memref<2x3x384xf32, #tpu.memory_space<vmem>>, vector<2x1x256xf32>
    %48 = vector.extract_strided_slice %0 {offsets = [0, 6], sizes = [6, 1], strides = [1, 1]} : vector<6x27xf32> to vector<6x1xf32>
    %49 = vector.shape_cast %48 : vector<6x1xf32> to vector<1x6x1xf32>
    %50 = vector.broadcast %49 : vector<1x6x1xf32> to vector<2x6x256xf32>
    %51 = vector.broadcast %47 : vector<2x1x256xf32> to vector<2x6x256xf32>
    %52 = arith.mulf %50, %51 : vector<2x6x256xf32>
    %53 = arith.addf %46, %52 : vector<2x6x256xf32>
    %c255_i32_12 = arith.constant 255 : i32
    %54 = tpu.dynamic_rotate %47 by %c255_i32_12 dim 2 : vector<2x1x256xf32>, i32 -> vector<2x1x256xf32>
    %55 = vector.extract_strided_slice %0 {offsets = [0, 7], sizes = [6, 1], strides = [1, 1]} : vector<6x27xf32> to vector<6x1xf32>
    %56 = vector.shape_cast %55 : vector<6x1xf32> to vector<1x6x1xf32>
    %57 = vector.broadcast %56 : vector<1x6x1xf32> to vector<2x6x256xf32>
    %58 = vector.broadcast %54 : vector<2x1x256xf32> to vector<2x6x256xf32>
    %59 = arith.mulf %57, %58 : vector<2x6x256xf32>
    %60 = arith.addf %53, %59 : vector<2x6x256xf32>
    %c254_i32_13 = arith.constant 254 : i32
    %61 = tpu.dynamic_rotate %47 by %c254_i32_13 dim 2 : vector<2x1x256xf32>, i32 -> vector<2x1x256xf32>
    %62 = vector.extract_strided_slice %0 {offsets = [0, 8], sizes = [6, 1], strides = [1, 1]} : vector<6x27xf32> to vector<6x1xf32>
    %63 = vector.shape_cast %62 : vector<6x1xf32> to vector<1x6x1xf32>
    %64 = vector.broadcast %63 : vector<1x6x1xf32> to vector<2x6x256xf32>
    %65 = vector.broadcast %61 : vector<2x1x256xf32> to vector<2x6x256xf32>
    %66 = arith.mulf %64, %65 : vector<2x6x256xf32>
    %67 = arith.addf %60, %66 : vector<2x6x256xf32>
    %c0_14 = arith.constant 0 : index
    %c1 = arith.constant 1 : index
    %c0_15 = arith.constant 0 : index
    %68 = vector.load %arg0[%c0_14, %c1, %c0_15] : memref<2x3x384xf32, #tpu.memory_space<vmem>>, vector<2x1x256xf32>
    %69 = vector.extract_strided_slice %0 {offsets = [0, 9], sizes = [6, 1], strides = [1, 1]} : vector<6x27xf32> to vector<6x1xf32>
    %70 = vector.shape_cast %69 : vector<6x1xf32> to vector<1x6x1xf32>
    %71 = vector.broadcast %70 : vector<1x6x1xf32> to vector<2x6x256xf32>
    %72 = vector.broadcast %68 : vector<2x1x256xf32> to vector<2x6x256xf32>
    %73 = arith.mulf %71, %72 : vector<2x6x256xf32>
    %74 = arith.addf %67, %73 : vector<2x6x256xf32>
    %c255_i32_16 = arith.constant 255 : i32
    %75 = tpu.dynamic_rotate %68 by %c255_i32_16 dim 2 : vector<2x1x256xf32>, i32 -> vector<2x1x256xf32>
    %76 = vector.extract_strided_slice %0 {offsets = [0, 10], sizes = [6, 1], strides = [1, 1]} : vector<6x27xf32> to vector<6x1xf32>
    %77 = vector.shape_cast %76 : vector<6x1xf32> to vector<1x6x1xf32>
    %78 = vector.broadcast %77 : vector<1x6x1xf32> to vector<2x6x256xf32>
    %79 = vector.broadcast %75 : vector<2x1x256xf32> to vector<2x6x256xf32>
    %80 = arith.mulf %78, %79 : vector<2x6x256xf32>
    %81 = arith.addf %74, %80 : vector<2x6x256xf32>
    %c254_i32_17 = arith.constant 254 : i32
    %82 = tpu.dynamic_rotate %68 by %c254_i32_17 dim 2 : vector<2x1x256xf32>, i32 -> vector<2x1x256xf32>
    %83 = vector.extract_strided_slice %0 {offsets = [0, 11], sizes = [6, 1], strides = [1, 1]} : vector<6x27xf32> to vector<6x1xf32>
    %84 = vector.shape_cast %83 : vector<6x1xf32> to vector<1x6x1xf32>
    %85 = vector.broadcast %84 : vector<1x6x1xf32> to vector<2x6x256xf32>
    %86 = vector.broadcast %82 : vector<2x1x256xf32> to vector<2x6x256xf32>
    %87 = arith.mulf %85, %86 : vector<2x6x256xf32>
    %88 = arith.addf %81, %87 : vector<2x6x256xf32>
    %c0_18 = arith.constant 0 : index
    %c1_19 = arith.constant 1 : index
    %c16_20 = arith.constant 16 : index
    %89 = vector.load %arg0[%c0_18, %c1_19, %c16_20] : memref<2x3x384xf32, #tpu.memory_space<vmem>>, vector<2x1x256xf32>
    %90 = vector.extract_strided_slice %0 {offsets = [0, 12], sizes = [6, 1], strides = [1, 1]} : vector<6x27xf32> to vector<6x1xf32>
    %91 = vector.shape_cast %90 : vector<6x1xf32> to vector<1x6x1xf32>
    %92 = vector.broadcast %91 : vector<1x6x1xf32> to vector<2x6x256xf32>
    %93 = vector.broadcast %89 : vector<2x1x256xf32> to vector<2x6x256xf32>
    %94 = arith.mulf %92, %93 : vector<2x6x256xf32>
    %95 = arith.addf %88, %94 : vector<2x6x256xf32>
    %c255_i32_21 = arith.constant 255 : i32
    %96 = tpu.dynamic_rotate %89 by %c255_i32_21 dim 2 : vector<2x1x256xf32>, i32 -> vector<2x1x256xf32>
    %97 = vector.extract_strided_slice %0 {offsets = [0, 13], sizes = [6, 1], strides = [1, 1]} : vector<6x27xf32> to vector<6x1xf32>
    %98 = vector.shape_cast %97 : vector<6x1xf32> to vector<1x6x1xf32>
    %99 = vector.broadcast %98 : vector<1x6x1xf32> to vector<2x6x256xf32>
    %100 = vector.broadcast %96 : vector<2x1x256xf32> to vector<2x6x256xf32>
    %101 = arith.mulf %99, %100 : vector<2x6x256xf32>
    %102 = arith.addf %95, %101 : vector<2x6x256xf32>
    %c254_i32_22 = arith.constant 254 : i32
    %103 = tpu.dynamic_rotate %89 by %c254_i32_22 dim 2 : vector<2x1x256xf32>, i32 -> vector<2x1x256xf32>
    %104 = vector.extract_strided_slice %0 {offsets = [0, 14], sizes = [6, 1], strides = [1, 1]} : vector<6x27xf32> to vector<6x1xf32>
    %105 = vector.shape_cast %104 : vector<6x1xf32> to vector<1x6x1xf32>
    %106 = vector.broadcast %105 : vector<1x6x1xf32> to vector<2x6x256xf32>
    %107 = vector.broadcast %103 : vector<2x1x256xf32> to vector<2x6x256xf32>
    %108 = arith.mulf %106, %107 : vector<2x6x256xf32>
    %109 = arith.addf %102, %108 : vector<2x6x256xf32>
    %c0_23 = arith.constant 0 : index
    %c1_24 = arith.constant 1 : index
    %c32_25 = arith.constant 32 : index
    %110 = vector.load %arg0[%c0_23, %c1_24, %c32_25] : memref<2x3x384xf32, #tpu.memory_space<vmem>>, vector<2x1x256xf32>
    %111 = vector.extract_strided_slice %0 {offsets = [0, 15], sizes = [6, 1], strides = [1, 1]} : vector<6x27xf32> to vector<6x1xf32>
    %112 = vector.shape_cast %111 : vector<6x1xf32> to vector<1x6x1xf32>
    %113 = vector.broadcast %112 : vector<1x6x1xf32> to vector<2x6x256xf32>
    %114 = vector.broadcast %110 : vector<2x1x256xf32> to vector<2x6x256xf32>
    %115 = arith.mulf %113, %114 : vector<2x6x256xf32>
    %116 = arith.addf %109, %115 : vector<2x6x256xf32>
    %c255_i32_26 = arith.constant 255 : i32
    %117 = tpu.dynamic_rotate %110 by %c255_i32_26 dim 2 : vector<2x1x256xf32>, i32 -> vector<2x1x256xf32>
    %118 = vector.extract_strided_slice %0 {offsets = [0, 16], sizes = [6, 1], strides = [1, 1]} : vector<6x27xf32> to vector<6x1xf32>
    %119 = vector.shape_cast %118 : vector<6x1xf32> to vector<1x6x1xf32>
    %120 = vector.broadcast %119 : vector<1x6x1xf32> to vector<2x6x256xf32>
    %121 = vector.broadcast %117 : vector<2x1x256xf32> to vector<2x6x256xf32>
    %122 = arith.mulf %120, %121 : vector<2x6x256xf32>
    %123 = arith.addf %116, %122 : vector<2x6x256xf32>
    %c254_i32_27 = arith.constant 254 : i32
    %124 = tpu.dynamic_rotate %110 by %c254_i32_27 dim 2 : vector<2x1x256xf32>, i32 -> vector<2x1x256xf32>
    %125 = vector.extract_strided_slice %0 {offsets = [0, 17], sizes = [6, 1], strides = [1, 1]} : vector<6x27xf32> to vector<6x1xf32>
    %126 = vector.shape_cast %125 : vector<6x1xf32> to vector<1x6x1xf32>
    %127 = vector.broadcast %126 : vector<1x6x1xf32> to vector<2x6x256xf32>
    %128 = vector.broadcast %124 : vector<2x1x256xf32> to vector<2x6x256xf32>
    %129 = arith.mulf %127, %128 : vector<2x6x256xf32>
    %130 = arith.addf %123, %129 : vector<2x6x256xf32>
    %c0_28 = arith.constant 0 : index
    %c2 = arith.constant 2 : index
    %c0_29 = arith.constant 0 : index
    %131 = vector.load %arg0[%c0_28, %c2, %c0_29] : memref<2x3x384xf32, #tpu.memory_space<vmem>>, vector<2x1x256xf32>
    %132 = vector.extract_strided_slice %0 {offsets = [0, 18], sizes = [6, 1], strides = [1, 1]} : vector<6x27xf32> to vector<6x1xf32>
    %133 = vector.shape_cast %132 : vector<6x1xf32> to vector<1x6x1xf32>
    %134 = vector.broadcast %133 : vector<1x6x1xf32> to vector<2x6x256xf32>
    %135 = vector.broadcast %131 : vector<2x1x256xf32> to vector<2x6x256xf32>
    %136 = arith.mulf %134, %135 : vector<2x6x256xf32>
    %137 = arith.addf %130, %136 : vector<2x6x256xf32>
    %c255_i32_30 = arith.constant 255 : i32
    %138 = tpu.dynamic_rotate %131 by %c255_i32_30 dim 2 : vector<2x1x256xf32>, i32 -> vector<2x1x256xf32>
    %139 = vector.extract_strided_slice %0 {offsets = [0, 19], sizes = [6, 1], strides = [1, 1]} : vector<6x27xf32> to vector<6x1xf32>
    %140 = vector.shape_cast %139 : vector<6x1xf32> to vector<1x6x1xf32>
    %141 = vector.broadcast %140 : vector<1x6x1xf32> to vector<2x6x256xf32>
    %142 = vector.broadcast %138 : vector<2x1x256xf32> to vector<2x6x256xf32>
    %143 = arith.mulf %141, %142 : vector<2x6x256xf32>
    %144 = arith.addf %137, %143 : vector<2x6x256xf32>
    %c254_i32_31 = arith.constant 254 : i32
    %145 = tpu.dynamic_rotate %131 by %c254_i32_31 dim 2 : vector<2x1x256xf32>, i32 -> vector<2x1x256xf32>
    %146 = vector.extract_strided_slice %0 {offsets = [0, 20], sizes = [6, 1], strides = [1, 1]} : vector<6x27xf32> to vector<6x1xf32>
    %147 = vector.shape_cast %146 : vector<6x1xf32> to vector<1x6x1xf32>
    %148 = vector.broadcast %147 : vector<1x6x1xf32> to vector<2x6x256xf32>
    %149 = vector.broadcast %145 : vector<2x1x256xf32> to vector<2x6x256xf32>
    %150 = arith.mulf %148, %149 : vector<2x6x256xf32>
    %151 = arith.addf %144, %150 : vector<2x6x256xf32>
    %c0_32 = arith.constant 0 : index
    %c2_33 = arith.constant 2 : index
    %c16_34 = arith.constant 16 : index
    %152 = vector.load %arg0[%c0_32, %c2_33, %c16_34] : memref<2x3x384xf32, #tpu.memory_space<vmem>>, vector<2x1x256xf32>
    %153 = vector.extract_strided_slice %0 {offsets = [0, 21], sizes = [6, 1], strides = [1, 1]} : vector<6x27xf32> to vector<6x1xf32>
    %154 = vector.shape_cast %153 : vector<6x1xf32> to vector<1x6x1xf32>
    %155 = vector.broadcast %154 : vector<1x6x1xf32> to vector<2x6x256xf32>
    %156 = vector.broadcast %152 : vector<2x1x256xf32> to vector<2x6x256xf32>
    %157 = arith.mulf %155, %156 : vector<2x6x256xf32>
    %158 = arith.addf %151, %157 : vector<2x6x256xf32>
    %c255_i32_35 = arith.constant 255 : i32
    %159 = tpu.dynamic_rotate %152 by %c255_i32_35 dim 2 : vector<2x1x256xf32>, i32 -> vector<2x1x256xf32>
    %160 = vector.extract_strided_slice %0 {offsets = [0, 22], sizes = [6, 1], strides = [1, 1]} : vector<6x27xf32> to vector<6x1xf32>
    %161 = vector.shape_cast %160 : vector<6x1xf32> to vector<1x6x1xf32>
    %162 = vector.broadcast %161 : vector<1x6x1xf32> to vector<2x6x256xf32>
    %163 = vector.broadcast %159 : vector<2x1x256xf32> to vector<2x6x256xf32>
    %164 = arith.mulf %162, %163 : vector<2x6x256xf32>
    %165 = arith.addf %158, %164 : vector<2x6x256xf32>
    %c254_i32_36 = arith.constant 254 : i32
    %166 = tpu.dynamic_rotate %152 by %c254_i32_36 dim 2 : vector<2x1x256xf32>, i32 -> vector<2x1x256xf32>
    %167 = vector.extract_strided_slice %0 {offsets = [0, 23], sizes = [6, 1], strides = [1, 1]} : vector<6x27xf32> to vector<6x1xf32>
    %168 = vector.shape_cast %167 : vector<6x1xf32> to vector<1x6x1xf32>
    %169 = vector.broadcast %168 : vector<1x6x1xf32> to vector<2x6x256xf32>
    %170 = vector.broadcast %166 : vector<2x1x256xf32> to vector<2x6x256xf32>
    %171 = arith.mulf %169, %170 : vector<2x6x256xf32>
    %172 = arith.addf %165, %171 : vector<2x6x256xf32>
    %c0_37 = arith.constant 0 : index
    %c2_38 = arith.constant 2 : index
    %c32_39 = arith.constant 32 : index
    %173 = vector.load %arg0[%c0_37, %c2_38, %c32_39] : memref<2x3x384xf32, #tpu.memory_space<vmem>>, vector<2x1x256xf32>
    %174 = vector.extract_strided_slice %0 {offsets = [0, 24], sizes = [6, 1], strides = [1, 1]} : vector<6x27xf32> to vector<6x1xf32>
    %175 = vector.shape_cast %174 : vector<6x1xf32> to vector<1x6x1xf32>
    %176 = vector.broadcast %175 : vector<1x6x1xf32> to vector<2x6x256xf32>
    %177 = vector.broadcast %173 : vector<2x1x256xf32> to vector<2x6x256xf32>
    %178 = arith.mulf %176, %177 : vector<2x6x256xf32>
    %179 = arith.addf %172, %178 : vector<2x6x256xf32>
    %c255_i32_40 = arith.constant 255 : i32
    %180 = tpu.dynamic_rotate %173 by %c255_i32_40 dim 2 : vector<2x1x256xf32>, i32 -> vector<2x1x256xf32>
    %181 = vector.extract_strided_slice %0 {offsets = [0, 25], sizes = [6, 1], strides = [1, 1]} : vector<6x27xf32> to vector<6x1xf32>
    %182 = vector.shape_cast %181 : vector<6x1xf32> to vector<1x6x1xf32>
    %183 = vector.broadcast %182 : vector<1x6x1xf32> to vector<2x6x256xf32>
    %184 = vector.broadcast %180 : vector<2x1x256xf32> to vector<2x6x256xf32>
    %185 = arith.mulf %183, %184 : vector<2x6x256xf32>
    %186 = arith.addf %179, %185 : vector<2x6x256xf32>
    %c254_i32_41 = arith.constant 254 : i32
    %187 = tpu.dynamic_rotate %173 by %c254_i32_41 dim 2 : vector<2x1x256xf32>, i32 -> vector<2x1x256xf32>
    %188 = vector.extract_strided_slice %0 {offsets = [0, 26], sizes = [6, 1], strides = [1, 1]} : vector<6x27xf32> to vector<6x1xf32>
    %189 = vector.shape_cast %188 : vector<6x1xf32> to vector<1x6x1xf32>
    %190 = vector.broadcast %189 : vector<1x6x1xf32> to vector<2x6x256xf32>
    %191 = vector.broadcast %187 : vector<2x1x256xf32> to vector<2x6x256xf32>
    %192 = arith.mulf %190, %191 : vector<2x6x256xf32>
    %193 = arith.addf %186, %192 : vector<2x6x256xf32>
    %c0_42 = arith.constant 0 : index
    %c0_43 = arith.constant 0 : index
    %c0_44 = arith.constant 0 : index
    %194 = vector.load %arg3[%c0_42, %c0_43, %c0_44] : memref<2x6x256xf32, #tpu.memory_space<vmem>>, vector<2x6x256xf32>
    tpu.vector_store %arg3[%c0_42, %c0_43, %c0_44], %193 {strides = array<i32>} : memref<2x6x256xf32, #tpu.memory_space<vmem>>, vector<2x6x256xf32>,
    return
  }
}

</mosaic_0001>

<bundles_post_ra>
// kernel: conv2d_pallas.1
= control target key start
LH: loop header
LB: loop body
LE: loop exit
PB: predicated region body
PF: predicated region fallthrough
CT: control target
= control target key end

     0   :  { %v2415_v0 = vlaneseq  ;;  %v1400_v1 = vmov 0   ;;  %v1401_v4 = vmov 3   ;;  %s1402_s19 = smov 127   ;;  %v1403_v13 = vmov 1   ;;  %s1404_s20 = smov 126   ;;  %s2411_s2 = inlined_call_operand.vmem [shape: f32[6,1], index: 2, kind: input, shape index: {}]   ;;  %s2412_s1 = inlined_call_operand.vmem [shape: f32[6,27], index: 1, kind: input, shape index: {}]   ;;  %s2413_s0 = inlined_call_operand.vmem [shape: f32[2,3,384], index: 0, kind: input, shape index: {}]   ;;  %s2414_s3 = inlined_call_operand.vmem [shape: f32[2,6,256], index: 3, kind: output, shape index: {}]  }
   0x1   :  { %1372 = vset.pattern.permute.xlu0 %v1400_v1  ;;  %v15_v2 = vld [vmem:[%s2411_s2] sm:$0x3f]  ;;  %1375 = vset.pattern.permute.xlu1 %v1401_v4  ;;  %v1331_v9 = vld [vmem:[%s2413_s0 + $0xc] ss:$4 sm:$0x3]  ;;  %v1405_v15 = vmov 2  }
   0x2   :  { %18 = vperm.xlu0 %1372, %v15_v2   ;;  %v32_v3 = vshrl.u32 %v2415_v0, 7  ;;  %v1458_v5 = vld [vmem:[%s2412_s1] sm:$0x3f]  ;;  %v1332_v18 = vld [vmem:[%s2413_s0 + $0xc] ss:$4 sm:$0x7] }
   0x3   :  { %2440 = vst [vmem:[#allocation2_spill] sm:$0xff] %v1458_v5  ;;  %v21_v6 = vld [vmem:[%s2413_s0] ss:$4 sm:$0x3]  ;;  %s1406_s25 = smov 112   ;;  %v1407_v20 = vmov 5  }
   0x4   :  { %v1463_v7 = vsub.s32 0, %v32_v3  ;;  %v1465_v8 = vsub.s32 1, %v32_v3  ;;  %v143_v16 = vld [vmem:[%s2413_s0] ss:$4 sm:$0x7]  ;;  %v1515_v21 = vsub.s32 2, %v32_v3 }
   0x5   :  { %v1408_v25 = vmov 4   ;;  %s1409_s26 = smov 96   ;;  %v1410_v27 = vmov 8   ;;  %v1334_v28 = vld [vmem:[%s2413_s0 + $0xd] ss:$4 sm:$0x3] }
   0x6   :  { %2441 = vst [vmem:[#allocation3_spill] sm:$0xff] %v1465_v8  ;;  %26 = vperm.xlu0 %1372, %v1458_v5   ;;  %v1472_v10 = vrot.slane %v21_v6, %v1463_v7  ;;  %v1475_v11 = vrot.slane %v21_v6, %v1465_v8  ;;  %v1480_v12 = vrot.slane %v1331_v9, %v1463_v7  ;;  %2442 = vst [vmem:[#allocation4_spill] sm:$0xff] %v1515_v21  ;;  %v1411_v29 = vmov 6   ;;  %v1333_v33 = vld [vmem:[%s2413_s0 + $0x1] ss:$4 sm:$0x3] }
   0x7   :  { %v1487_v14 = vrot.slane %v1331_v9, %v1465_v8  ;;  %v1501_v17 = vrot.slane %v143_v16, %v1465_v8  ;;  %v1511_v19 = vrot.slane %v1332_v18, %v1463_v7  ;;  %v1520_v22 = vrot.slane %v1332_v18, %v1515_v21 }
   0x8   :  { %59 = vrot.lane.b32.xlu1 %v1472_v10, %s1402_s19  ;;  %v1524_v23 = vrot.slane %v143_v16, %v1463_v7  ;;  %v1531_v24 = vrot.slane %v143_v16, %v1515_v21  ;;  %v1537_v26 = vrot.slane %v1332_v18, %v1465_v8  ;;  %v1554_v30 = vrot.slane %v1334_v28, %v1463_v7 }
   0x9   :  { %v1412_v31 = vmov 7   ;;  %v1561_v32 = vrot.slane %v1334_v28, %v1465_v8  ;;  %v1413_v34 = vmov 9   ;;  %v1575_v35 = vrot.slane %v1333_v33, %v1463_v7 }
   0xa   :  { %63 = vrot.lane.b32.xlu0 %v1475_v11, %s1402_s19  ;;  %2443 = vst [vmem:[#allocation5_spill] sm:$0xff] %v1554_v30  ;;  %v1580_v36 = vrot.slane %v1333_v33, %v1465_v8  ;;  %v1414_v37 = vmov 10   ;;  %v1415_v38 = vmov 12   ;;  %v1416_v39 = vmov 11  }
   0xb   :  { %1373 = vset.pattern.permute.xlu0 %v1403_v13  ;;  %2444 = vst [vmem:[#allocation6_spill] sm:$0xff] %v1561_v32  ;;  %vm205_vm0 = vcmask 916480   ;;  %vm346_vm1 = vcmask 785408  }
   0xc   :  { %61 = vrot.lane.b32.xlu1 %v1480_v12, %s1402_s19  ;;  %2445 = vst [vmem:[#allocation7_spill] sm:$0xff] %v1580_v36 }
   0xe   :  { %75 = vperm.xlu0 %1373, %v1458_v5  }
  0x10   :  { %65 = vrot.lane.b32.xlu1 %v1487_v14, %s1402_s19 }
  0x12   :  { %106 = vrot.lane.b32.xlu0 %v1475_v11, %s1404_s20 }
  0x13   :  { %1374 = vset.pattern.permute.xlu0 %v1405_v15 }
  0x14   :  { %102 = vrot.lane.b32.xlu1 %v1472_v10, %s1404_s20 }
  0x16   :  { %116 = vperm.xlu0 %1374, %v1458_v5  }
  0x18   :  { %104 = vrot.lane.b32.xlu1 %v1480_v12, %s1404_s20 }
  0x1a   :  { %220 = vrot.lane.b32.xlu0 %v1501_v17, %s1406_s25 }
  0x1b   :  { %1377 = vset.pattern.permute.xlu0 %v1407_v20 }
  0x1c   :  { %108 = vrot.lane.b32.xlu1 %v1487_v14, %s1404_s20 }
  0x1e   :  { %224 = vrot.lane.b32.xlu0 %v1511_v19, %s1406_s25 }
  0x20   :  { %146 = vperm.xlu1 %1375, %v1458_v5  }
  0x22   :  { %228 = vrot.lane.b32.xlu0 %v1520_v22, %s1406_s25 }
  0x24   :  { %218 = vrot.lane.b32.xlu1 %v1524_v23, %s1406_s25 }
  0x25   :  { %1376 = vset.pattern.permute.xlu1 %v1408_v25 }
  0x26   :  { %291 = vperm.xlu0 %1377, %v1458_v5  }
  0x28   :  { %222 = vrot.lane.b32.xlu1 %v1531_v24, %s1406_s25 }
  0x2a   :  { %361 = vrot.lane.b32.xlu0 %v1501_v17, %s1409_s26 }
  0x2b   :  { %1380 = vset.pattern.permute.xlu0 %v1410_v27 }
  0x2c   :  { %226 = vrot.lane.b32.xlu1 %v1537_v26, %s1406_s25 }
  0x2e   :  { %365 = vrot.lane.b32.xlu0 %v1511_v19, %s1409_s26 }
  0x30   :  { %251 = vperm.xlu1 %1376, %v1458_v5  }
  0x32   :  { %369 = vrot.lane.b32.xlu0 %v1520_v22, %s1409_s26 }
  0x34   :  { %1378 = vset.pattern.permute.xlu1 %v1411_v29 }
  0x35   :  { %319 = vperm.xlu1 %1378, %v1458_v5  }
  0x36   :  { %432 = vperm.xlu0 %1380, %v1458_v5  }
  0x39   :  { %359 = vrot.lane.b32.xlu1 %v1524_v23, %s1409_s26 }
  0x3a   :  { %1379 = vset.pattern.permute.xlu1 %v1412_v31  ;;  %499 = vrot.lane.b32.xlu0 %v1554_v30, %s1402_s19 }
  0x3b   :  { %1383 = vset.pattern.permute.xlu0 %v1416_v39 }
  0x3d   :  { %363 = vrot.lane.b32.xlu1 %v1531_v24, %s1409_s26 }
  0x3e   :  { %503 = vrot.lane.b32.xlu0 %v1561_v32, %s1402_s19 }
  0x41   :  { %367 = vrot.lane.b32.xlu1 %v1537_v26, %s1409_s26 }
  0x45   :  { %392 = vperm.xlu1 %1379, %v1458_v5  }
  0x49   :  { %1381 = vset.pattern.permute.xlu1 %v1413_v34 }
  0x4a   :  { %464 = vperm.xlu1 %1381, %v1458_v5  }
  0x4e   :  { %497 = vrot.lane.b32.xlu1 %v1575_v35, %s1402_s19 }
  0x4f   :  { %1382 = vset.pattern.permute.xlu1 %v1414_v37 }
  0x52   :  { %501 = vrot.lane.b32.xlu1 %v1580_v36, %s1402_s19 }
  0x56   :  { %510 = vperm.xlu1 %1382, %v1458_v5  }
  0x5a   :  { %1384 = vset.pattern.permute.xlu1 %v1415_v38 }
  0x7a   :  { %v1585_v40 = vpop.permute.xlu1 %59 }
  0x7e   :  { %v1589_v42 = vpop.permute.xlu1 %61 }
  0x81   :  { %v1587_v41 = vpop.permute.xlu0 %18 }
  0x82   :  { %v1593_v44 = vpop.permute.xlu1 %65 }
  0x85   :  { %v1591_v43 = vpop.permute.xlu0 %26 }
  0x86   :  { %v1597_v46 = vpop.permute.xlu1 %102 }
  0x89   :  { %v1595_v45 = vpop.permute.xlu0 %63 }
  0x8a   :  { %v1601_v48 = vpop.permute.xlu1 %104 }
  0x8d   :  { %v1599_v47 = vpop.permute.xlu0 %75 }
  0x8e   :  { %v1605_v50 = vpop.permute.xlu1 %108 }
  0x91   :  { %v1603_v49 = vpop.permute.xlu0 %106 }
  0x95   :  { %v1607_v51 = vpop.permute.xlu0 %116 }
  0x99   :  { %v221_v53 = vpop.permute.xlu0 %220 }
  0x9d   :  { %v225_v56 = vpop.permute.xlu0 %224 }
  0x9f   :  { %v147_v52 = vpop.permute.xlu1 %146 }
  0xa0   :  { %v181_v27 = vmul.f32 %v1524_v23, %v147_v52  ;;  %v183_v28 = vmul.f32 %v1531_v24, %v147_v52  ;;  %v185_v29 = vmul.f32 %v1537_v26, %v147_v52  ;;  %v182_v31 = vmul.f32 %v1501_v17, %v147_v52 }
  0xa1   :  { %v229_v60 = vpop.permute.xlu0 %228  ;;  %v184_v34 = vmul.f32 %v1511_v19, %v147_v52  ;;  %v186_v38 = vmul.f32 %v1520_v22, %v147_v52 }
  0xa3   :  { %v219_v54 = vpop.permute.xlu1 %218 }
  0xa4   :  { %v230_v55 = vsel %vm205_vm0, %v219_v54, %v221_v53 }
  0xa5   :  { %238 = vrot.lane.b32.xlu1 %v230_v55, %s1402_s19  ;;  %v1619_v1 = vpop.permute.xlu0 %291 }
  0xa7   :  { %v223_v57 = vpop.permute.xlu1 %222 }
  0xa8   :  { %v231_v58 = vsel %vm205_vm0, %v221_v53, %v223_v57 }
  0xa9   :  { %242 = vrot.lane.b32.xlu1 %v231_v58, %s1402_s19  ;;  %v362_v3 = vpop.permute.xlu0 %361 }
  0xab   :  { %v227_v59 = vpop.permute.xlu1 %226 }
  0xac   :  { %v232_v61 = vsel %vm205_vm0, %v225_v56, %v227_v59  ;;  %v233_v63 = vsel %vm205_vm0, %v227_v59, %v229_v60 }
  0xad   :  { %280 = vrot.lane.b32.xlu1 %v232_v61, %s1404_s20  ;;  %240 = vrot.lane.b32.xlu0 %v232_v61, %s1402_s19  ;;  %v366_v9 = vpop.permute.xlu0 %365 }
  0xaf   :  { %v1616_v62 = vpop.permute.xlu1 %251 }
  0xb1   :  { %284 = vrot.lane.b32.xlu1 %v233_v63, %s1404_s20  ;;  %244 = vrot.lane.b32.xlu0 %v233_v63, %s1402_s19  ;;  %v370_v20 = vpop.permute.xlu0 %369 }
  0xb4   :  { %v320_v2 = vpop.permute.xlu1 %319 }
  0xb5   :  { %278 = vrot.lane.b32.xlu0 %v230_v55, %s1404_s20  ;;  %v322_v33 = vmul.f32 %v320_v2, %v1524_v23  ;;  %v324_v37 = vmul.f32 %v320_v2, %v1531_v24  ;;  %v326_v39 = vmul.f32 %v320_v2, %v1537_v26  ;;  %v323_v53 = vmul.f32 %v320_v2, %v1501_v17 }
  0xb6   :  { %v325_v23 = vmul.f32 %v320_v2, %v1511_v19  ;;  %v327_v24 = vmul.f32 %v320_v2, %v1520_v22 }
  0xb8   :  { %v360_v4 = vpop.permute.xlu1 %359 }
  0xb9   :  { %282 = vrot.lane.b32.xlu0 %v231_v58, %s1404_s20  ;;  %v371_v6 = vsel %vm346_vm1, %v360_v4, %v362_v3 }
  0xba   :  { %379 = vrot.lane.b32.xlu1 %v371_v6, %s1402_s19 }
  0xbc   :  { %v364_v13 = vpop.permute.xlu1 %363 }
  0xbd   :  { %v372_v15 = vsel %vm346_vm1, %v362_v3, %v364_v13 }
  0xbe   :  { %383 = vrot.lane.b32.xlu1 %v372_v15, %s1402_s19 }
  0xc0   :  { %v368_v16 = vpop.permute.xlu1 %367 }
  0xc1   :  { %v373_v18 = vsel %vm346_vm1, %v366_v9, %v368_v16  ;;  %v374_v25 = vsel %vm346_vm1, %v368_v16, %v370_v20 }
  0xc2   :  { %421 = vrot.lane.b32.xlu1 %v373_v18, %s1404_s20  ;;  %381 = vrot.lane.b32.xlu0 %v373_v18, %s1402_s19 }
  0xc4   :  { %v1671_v17 = vpop.permute.xlu1 %392 }
  0xc6   :  { %425 = vrot.lane.b32.xlu1 %v374_v25, %s1404_s20  ;;  %385 = vrot.lane.b32.xlu0 %v374_v25, %s1402_s19  ;;  %v1336_v25 = vld [vmem:[%s2413_s0 + $0xd] ss:$4 sm:$0x7] }
  0xc9   :  { %v1673_v19 = vpop.permute.xlu1 %464 }
  0xca   :  { %193 = vrot.lane.b32.xlu1 %v181_v27, %s1406_s25  ;;  %419 = vrot.lane.b32.xlu0 %v371_v6, %s1404_s20  ;;  %v1725_v27 = vpop.permute.xlu0 %432 }
  0xcd   :  { %v1675_v22 = vpop.permute.xlu1 %497 }
  0xce   :  { %197 = vrot.lane.b32.xlu1 %v183_v28, %s1406_s25  ;;  %423 = vrot.lane.b32.xlu0 %v372_v15, %s1404_s20  ;;  %v1335_v15 = vld [vmem:[%s2413_s0 + $0x1] ss:$4 sm:$0x7] }
  0xcf   :  { %v1717_v18 = vrot.slane %v1335_v15, %v1465_v8  ;;  %v1720_v20 = vrot.slane %v1335_v15, %v1463_v7 }
  0xd1   :  { %v1677_v26 = vpop.permute.xlu1 %501  ;;  %2449 = vst [vmem:[#allocation11_spill] sm:$0xff] %v1717_v18  ;;  %2450 = vst [vmem:[#allocation12_spill] sm:$0xff] %v1720_v20 }
  0xd2   :  { %201 = vrot.lane.b32.xlu1 %v185_v29, %s1406_s25  ;;  %195 = vrot.lane.b32.xlu0 %v182_v31, %s1406_s25 }
  0xd5   :  { %v1679_v52 = vpop.permute.xlu1 %510 }
  0xd6   :  { %334 = vrot.lane.b32.xlu1 %v322_v33, %s1409_s26  ;;  %199 = vrot.lane.b32.xlu0 %v184_v34, %s1406_s25  ;;  %2446 = vst [vmem:[#allocation8_spill] sm:$0xff] %v1679_v52  ;;  %v1730_v33 = vrot.slane %v1336_v25, %v1463_v7  ;;  %v1733_v34 = vrot.slane %v1335_v15, %v1515_v21 }
  0xd8   :  { %2451 = vst [vmem:[#allocation13_spill] sm:$0xff] %v1730_v33  ;;  %2452 = vst [vmem:[#allocation14_spill] sm:$0xff] %v1733_v34 }
  0xda   :  { %338 = vrot.lane.b32.xlu1 %v324_v37, %s1409_s26  ;;  %203 = vrot.lane.b32.xlu0 %v186_v38, %s1406_s25  ;;  %v1737_v37 = vpop.permute.xlu0 %499 }
  0xde   :  { %342 = vrot.lane.b32.xlu1 %v326_v39, %s1409_s26  ;;  %336 = vrot.lane.b32.xlu0 %v323_v53, %s1409_s26  ;;  %v1742_v53 = vrot.slane %v1336_v25, %v1515_v21 }
  0xe0   :  { %2453 = vst [vmem:[#allocation15_spill] sm:$0xff] %v1742_v53 }
  0xe2   :  { %539 = vrot.lane.b32.xlu1 %v1554_v30, %s1404_s20  ;;  %340 = vrot.lane.b32.xlu0 %v325_v23, %s1409_s26  ;;  %v1745_v23 = vrot.slane %v1336_v25, %v1465_v8 }
  0xe4   :  { %2454 = vst [vmem:[#allocation16_spill] sm:$0xff] %v1745_v23 }
  0xe6   :  { %543 = vrot.lane.b32.xlu1 %v1561_v32, %s1404_s20  ;;  %344 = vrot.lane.b32.xlu0 %v327_v24, %s1409_s26 }
  0xea   :  { %580 = vperm.xlu1 %1384, %v1458_v5   ;;  %537 = vrot.lane.b32.xlu0 %v1575_v35, %s1404_s20 }
  0xee   :  { %541 = vrot.lane.b32.xlu0 %v1580_v36, %s1404_s20 }
  0xf2   :  { %550 = vperm.xlu0 %1383, %v1458_v5  }
 0x117   :  { %v1681_v54 = vpop.permute.xlu1 %238 }
 0x11b   :  { %v1683_v55 = vpop.permute.xlu1 %242 }
 0x11f   :  { %v1685_v56 = vpop.permute.xlu1 %280 }
 0x123   :  { %v1687_v57 = vpop.permute.xlu1 %284 }
 0x12c   :  { %v1689_v58 = vpop.permute.xlu1 %379 }
 0x130   :  { %v1691_v59 = vpop.permute.xlu1 %383 }
 0x134   :  { %v1693_v60 = vpop.permute.xlu1 %421 }
 0x138   :  { %v1695_v61 = vpop.permute.xlu1 %425 }
 0x13c   :  { %v1697_v63 = vpop.permute.xlu1 %193 }
 0x140   :  { %v1699_v2 = vpop.permute.xlu1 %197 }
 0x144   :  { %v1701_v3 = vpop.permute.xlu1 %201 }
 0x148   :  { %v1703_v4 = vpop.permute.xlu1 %334 }
 0x14c   :  { %v1705_v6 = vpop.permute.xlu1 %338 }
 0x150   :  { %v1707_v9 = vpop.permute.xlu1 %342 }
 0x154   :  { %v1709_v13 = vpop.permute.xlu1 %539 }
 0x155   :  { %2447 = vst [vmem:[#allocation9_spill] sm:$0xff] %v1709_v13 }
 0x158   :  { %v1714_v16 = vpop.permute.xlu1 %543 }
 0x159   :  { %2448 = vst [vmem:[#allocation10_spill] sm:$0xff] %v1714_v16 }
 0x169   :  { %v581_v28 = vpop.permute.xlu1 %580 }
 0x16a   :  { %v616_v29 = vmul.f32 %v1717_v18, %v581_v28  ;;  %v615_v31 = vmul.f32 %v1720_v20, %v581_v28  ;;  %v618_v38 = vmul.f32 %v1730_v33, %v581_v28  ;;  %v617_v39 = vmul.f32 %v1733_v34, %v581_v28 }
 0x16b   :  { %v620_v24 = vmul.f32 %v1742_v53, %v581_v28  ;;  %v619_v15 = vmul.f32 %v1745_v23, %v581_v28 }
 0x16c   :  { %629 = vrot.lane.b32.xlu0 %v616_v29, %s1406_s25  ;;  %627 = vrot.lane.b32.xlu1 %v615_v31, %s1406_s25  ;;  %v1751_v29 = vpop.permute.xlu0 %503  ;;  %v1417_v31 = vmov 13  }
 0x16d   :  { %1385 = vset.pattern.permute.xlu1 %v1417_v31 }
 0x170   :  { %633 = vrot.lane.b32.xlu0 %v618_v38, %s1406_s25  ;;  %631 = vrot.lane.b32.xlu1 %v617_v39, %s1406_s25  ;;  %v1759_v25 = vpop.permute.xlu0 %240  ;;  %v1418_v38 = vmov 14  }
 0x171   :  { %1386 = vset.pattern.permute.xlu0 %v1418_v38 }
 0x174   :  { %637 = vrot.lane.b32.xlu0 %v620_v24, %s1406_s25  ;;  %635 = vrot.lane.b32.xlu1 %v619_v15, %s1406_s25  ;;  %v1765_v28 = vpop.permute.xlu0 %244 }
 0x178   :  { %653 = vrot.lane.b32.xlu0 %v1717_v18, %s1406_s25  ;;  %651 = vrot.lane.b32.xlu1 %v1720_v20, %s1406_s25  ;;  %v279_v39 = vpop.permute.xlu0 %278 }
 0x17c   :  { %655 = vrot.lane.b32.xlu1 %v1733_v34, %s1406_s25  ;;  %657 = vrot.lane.b32.xlu0 %v1730_v33, %s1406_s25  ;;  %v283_v24 = vpop.permute.xlu0 %282  ;;  %v2455_v34 = vlaneseq }
 0x17e   :  { %v1780_v33 = vand.u32 127, %v2455_v34  ;;  %v51_v34 = vmul.f32 %v1472_v10, %v1591_v43  ;;  %v52_v10 = vmul.f32 %v1475_v11, %v1591_v43 }
 0x180   :  { %659 = vrot.lane.b32.xlu1 %v1745_v23, %s1406_s25  ;;  %661 = vrot.lane.b32.xlu0 %v1742_v53, %s1406_s25  ;;  %v1771_v15 = vpop.permute.xlu0 %381  ;;  %vm69_vm2 = vcmp.lt.s32.totalorder %v1780_v33, 127  ;;  %vm110_vm3 = vcmp.lt.s32.totalorder %v1780_v33, 126 }
 0x181   :  { %v70_v38 = vsel %vm69_vm2, %v1585_v40, %v1595_v45  ;;  %v111_v20 = vsel %vm110_vm3, %v1597_v46, %v1603_v49  ;;  %v72_v18 = vsel %vm69_vm2, %v1595_v45, %v1585_v40  ;;  %v113_v32 = vsel %vm110_vm3, %v1603_v49, %v1597_v46 }
 0x182   :  { %v81_v5 = vrot.slane %v70_v38, %v1463_v7  ;;  %v122_v30 = vrot.slane %v111_v20, %v1463_v7  ;;  %v71_v13 = vsel %vm69_vm2, %v1589_v42, %v1593_v44  ;;  %v85_v16 = vrot.slane %v72_v18, %v1463_v7 }
 0x183   :  { %v73_v40 = vsel %vm69_vm2, %v1593_v44, %v1589_v42  ;;  %v53_v45 = vmul.f32 %v1480_v12, %v1591_v43  ;;  %v55_v49 = vadd.f32 %v51_v34, %v1587_v41  ;;  %v126_v38 = vrot.slane %v113_v32, %v1463_v7 }
 0x184   :  { %v1773_v31 = vpop.permute.xlu0 %385  ;;  %v94_v46 = vmul.f32 %v81_v5, %v1599_v47  ;;  %v89_v11 = vrot.slane %v71_v13, %v1463_v7  ;;  %v54_v18 = vmul.f32 %v1487_v14, %v1591_v43  ;;  %v112_v42 = vsel %vm110_vm3, %v1601_v48, %v1605_v50 }
 0x185   :  { %v135_v12 = vmul.f32 %v122_v30, %v1607_v51  ;;  %v93_v5 = vrot.slane %v73_v40, %v1463_v7  ;;  %v95_v44 = vmul.f32 %v85_v16, %v1599_v47  ;;  %v246_v32 = vsel %vm69_vm2, %v1681_v54, %v1683_v55 }
 0x186   :  { %v56_v13 = vadd.f32 %v52_v10, %v1587_v41  ;;  %v96_v14 = vmul.f32 %v89_v11, %v1599_v47  ;;  %v114_v43 = vsel %vm110_vm3, %v1605_v50, %v1601_v48  ;;  %v98_v34 = vadd.f32 %v94_v46, %v55_v49 }
 0x187   :  { %v57_v30 = vadd.f32 %v53_v45, %v1587_v41  ;;  %v130_v40 = vrot.slane %v112_v42, %v1463_v7  ;;  %v248_v16 = vsel %vm69_vm2, %v1683_v55, %v1681_v54  ;;  %v136_v52 = vmul.f32 %v126_v38, %v1607_v51 }
 0x188   :  { %v1775_v0 = vpop.permute.xlu0 %419  ;;  %v97_v11 = vmul.f32 %v93_v5, %v1599_v47  ;;  %v257_v36 = vrot.slane %v246_v32, %v1463_v7  ;;  %v139_v48 = vadd.f32 %v135_v12, %v98_v34  ;;  %v58_v50 = vadd.f32 %v54_v18, %v1587_v41 }
 0x189   :  { %v134_v46 = vrot.slane %v114_v43, %v1463_v7  ;;  %v286_v49 = vsel %vm110_vm3, %v279_v39, %v283_v24  ;;  %v99_v54 = vadd.f32 %v95_v44, %v56_v13  ;;  %v137_v55 = vmul.f32 %v130_v40, %v1607_v51 }
 0x18a   :  { %v261_v38 = vrot.slane %v248_v16, %v1463_v7  ;;  %v100_v12 = vadd.f32 %v96_v14, %v57_v30  ;;  %v270_v18 = vmul.f32 %v257_v36, %v1616_v62  ;;  %v247_v5 = vsel %vm69_vm2, %v1759_v25, %v1765_v28 }
 0x18b   :  { %v140_v42 = vadd.f32 %v136_v52, %v99_v54  ;;  %v138_v41 = vmul.f32 %v134_v46, %v1607_v51  ;;  %v288_v44 = vsel %vm110_vm3, %v283_v24, %v279_v39  ;;  %v297_v32 = vrot.slane %v286_v49, %v1463_v7 }
 0x18c   :  { %v1777_v8 = vpop.permute.xlu0 %423  ;;  %v101_v51 = vadd.f32 %v97_v11, %v58_v50  ;;  %v271_v36 = vmul.f32 %v261_v38, %v1616_v62  ;;  %v287_v13 = vsel %vm110_vm3, %v1685_v56, %v1687_v57  ;;  %v387_v39 = vsel %vm69_vm2, %v1689_v58, %v1691_v59 }
 0x18d   :  { %v265_v43 = vrot.slane %v247_v5, %v1463_v7  ;;  %v289_v40 = vsel %vm110_vm3, %v1687_v57, %v1685_v56  ;;  %v310_v16 = vmul.f32 %v297_v32, %v1619_v1  ;;  %v389_v11 = vsel %vm69_vm2, %v1691_v59, %v1689_v58 }
 0x18e   :  { %v309_v54 = vrot.slane %v289_v40, %v1463_v7  ;;  %v427_v58 = vsel %vm110_vm3, %v1775_v0, %v1777_v8 }
 0x18f   :  { %v272_v49 = vmul.f32 %v265_v43, %v1616_v62  ;;  %v430_v43 = vsel %vm110_vm3, %v1695_v61, %v1693_v60 }
 0x190   :  { %v196_v21 = vpop.permute.xlu0 %195 }
 0x191   :  { %v206_v10 = vsel %vm205_vm0, %v1697_v63, %v196_v21  ;;  %v207_v47 = vsel %vm205_vm0, %v196_v21, %v1699_v2  ;;  %v249_v21 = vsel %vm69_vm2, %v1765_v28, %v1759_v25  ;;  %v141_v2 = vadd.f32 %v137_v55, %v100_v12 }
 0x192   :  { %v214_v63 = vadd.f32 %v206_v10, %v139_v48  ;;  %v215_v52 = vadd.f32 %v207_v47, %v140_v42  ;;  %v301_v25 = vrot.slane %v288_v44, %v1463_v7  ;;  %v269_v30 = vrot.slane %v249_v21, %v1463_v7 }
 0x193   :  { %v142_v10 = vadd.f32 %v138_v41, %v101_v51  ;;  %v388_v42 = vsel %vm69_vm2, %v1771_v15, %v1773_v31  ;;  %v438_v41 = vrot.slane %v427_v58, %v1463_v7  ;;  %v390_v44 = vsel %vm69_vm2, %v1773_v31, %v1771_v15 }
 0x194   :  { %v1782_v23 = vpop.permute.xlu0 %199  ;;  %v274_v24 = vadd.f32 %v270_v18, %v214_v63  ;;  %v275_v48 = vadd.f32 %v271_v36, %v215_v52  ;;  %v311_v55 = vmul.f32 %v301_v25, %v1619_v1  ;;  %v273_v59 = vmul.f32 %v269_v30, %v1616_v62 }
 0x195   :  { %v208_v28 = vsel %vm205_vm0, %v1782_v23, %v1701_v3  ;;  %v398_v23 = vrot.slane %v387_v39, %v1463_v7  ;;  %v429_v62 = vsel %vm110_vm3, %v1777_v8, %v1775_v0  ;;  %v313_v21 = vmul.f32 %v309_v54, %v1619_v1 }
 0x196   :  { %v216_v50 = vadd.f32 %v208_v28, %v141_v2  ;;  %v314_v56 = vadd.f32 %v310_v16, %v274_v24  ;;  %v315_v12 = vadd.f32 %v311_v55, %v275_v48  ;;  %v428_v8 = vsel %vm110_vm3, %v1693_v60, %v1695_v61 }
 0x197   :  { %v411_v63 = vmul.f32 %v398_v23, %v1671_v17  ;;  %v406_v51 = vrot.slane %v388_v42, %v1463_v7  ;;  %v442_v36 = vrot.slane %v429_v62, %v1463_v7  ;;  %v410_v31 = vrot.slane %v390_v44, %v1463_v7 }
 0x198   :  { %v1790_v53 = vpop.permute.xlu0 %203  ;;  %v276_v18 = vadd.f32 %v272_v49, %v216_v50  ;;  %v507_v30 = vsel %vm69_vm2, %v1677_v26, %v1675_v22  ;;  %v446_v16 = vrot.slane %v428_v8, %v1463_v7  ;;  %v2457_v49 = vld [vmem:[#allocation8_spill] sm:$0xff] }
 0x199   :  { %v209_v34 = vsel %vm205_vm0, %v1701_v3, %v1790_v53  ;;  %v305_v53 = vrot.slane %v287_v13, %v1463_v7  ;;  %v451_v13 = vmul.f32 %v438_v41, %v1725_v27  ;;  %v452_v60 = vmul.f32 %v442_v36, %v1725_v27  ;;  %v2460_v41 = vld [vmem:[#allocation5_spill] sm:$0xff] }
 0x19a   :  { %v217_v46 = vadd.f32 %v209_v34, %v142_v10  ;;  %v413_v61 = vmul.f32 %v406_v51, %v1671_v17  ;;  %v414_v10 = vmul.f32 %v410_v31, %v1671_v17  ;;  %v453_v55 = vmul.f32 %v446_v16, %v1725_v27 }
 0x19c   :  { %v1823_v20 = vpop.permute.xlu0 %336  ;;  %v277_v5 = vadd.f32 %v273_v59, %v217_v46  ;;  %v2456_v46 = vld [vmem:[#allocation7_spill] sm:$0xff] }
 0x19d   :  { %v347_v3 = vsel %vm346_vm1, %v1703_v4, %v1823_v20  ;;  %v402_v4 = vrot.slane %v389_v11, %v1463_v7  ;;  %v348_v38 = vsel %vm346_vm1, %v1823_v20, %v1705_v6  ;;  %v505_v6 = vsel %vm69_vm2, %v1675_v22, %v1677_v26 }
 0x19e   :  { %v355_v47 = vadd.f32 %v347_v3, %v314_v56  ;;  %v312_v20 = vmul.f32 %v305_v53, %v1619_v1  ;;  %v356_v32 = vadd.f32 %v348_v38, %v315_v12  ;;  %v317_v24 = vadd.f32 %v313_v21, %v277_v5  ;;  %v2458_v38 = vld [vmem:[#allocation10_spill] sm:$0xff] }
 0x19f   :  { %v412_v0 = vmul.f32 %v402_v4, %v1671_v17  ;;  %v516_v40 = vrot.slane %v505_v6, %v1463_v7  ;;  %v506_v22 = vsel %vm69_vm2, %v1737_v37, %v1751_v29  ;;  %v490_v17 = vmul.f32 %v2456_v46, %v1673_v19  ;;  %v2461_v6 = vld [vmem:[#allocation6_spill] sm:$0xff] }
 0x1a0   :  { %v1858_v45 = vpop.permute.xlu0 %340  ;;  %v415_v52 = vadd.f32 %v411_v63, %v355_v47  ;;  %v316_v39 = vadd.f32 %v312_v20, %v276_v18  ;;  %v520_v56 = vrot.slane %v507_v30, %v1463_v7  ;;  %v2459_v47 = vld [vmem:[#allocation9_spill] sm:$0xff]  ;;  %v524_v18 = vrot.slane %v506_v22, %v1463_v7 }
 0x1a1   :  { %v349_v15 = vsel %vm346_vm1, %v1858_v45, %v1707_v9  ;;  %v416_v25 = vadd.f32 %v412_v0, %v356_v32  ;;  %v489_v45 = vmul.f32 %v1575_v35, %v1673_v19  ;;  %v450_v35 = vrot.slane %v430_v43, %v1463_v7 }
 0x1a2   :  { %v455_v34 = vadd.f32 %v451_v13, %v415_v52  ;;  %v529_v54 = vmul.f32 %v516_v40, %v2457_v49  ;;  %v546_v63 = vsel %vm110_vm3, %v2459_v47, %v2458_v38  ;;  %v492_v20 = vmul.f32 %v2461_v6, %v1673_v19 }
 0x1a3   :  { %v456_v23 = vadd.f32 %v452_v60, %v416_v25  ;;  %v454_v58 = vmul.f32 %v450_v35, %v1725_v27  ;;  %v491_v27 = vmul.f32 %v2460_v41, %v1673_v19  ;;  %v530_v44 = vmul.f32 %v520_v56, %v2457_v49  ;;  %v2462_v56 = vld [vmem:[#allocation2_spill] sm:$0xff] }
 0x1a4   :  { %v345_v14 = vpop.permute.xlu0 %344  ;;  %v493_v50 = vadd.f32 %v489_v45, %v455_v34  ;;  %v564_v52 = vrot.slane %v546_v63, %v1463_v7  ;;  %v531_v13 = vmul.f32 %v524_v18, %v2457_v49 }
 0x1a5   :  { %v350_v1 = vsel %vm346_vm1, %v1707_v9, %v345_v14  ;;  %v357_v9 = vadd.f32 %v349_v15, %v316_v39  ;;  %v494_v42 = vadd.f32 %v490_v17, %v456_v23 }
 0x1a6   :  { %v358_v14 = vadd.f32 %v350_v1, %v317_v24 }
 0x1a7   :  { %v417_v26 = vadd.f32 %v413_v61, %v357_v9  ;;  %v534_v31 = vadd.f32 %v530_v44, %v494_v42 }
 0x1a8   :  { %v538_v57 = vpop.permute.xlu0 %537  ;;  %v418_v53 = vadd.f32 %v414_v10, %v358_v14 }
 0x1a9   :  { %v457_v12 = vadd.f32 %v453_v55, %v417_v26 }
 0x1aa   :  { %v458_v62 = vadd.f32 %v454_v58, %v418_v53 }
 0x1ab   :  { %v495_v36 = vadd.f32 %v491_v27, %v457_v12 }
 0x1ac   :  { %v542_v2 = vpop.permute.xlu0 %541  ;;  %v496_v15 = vadd.f32 %v492_v20, %v458_v62 }
 0x1ad   :  { %v545_v28 = vsel %vm110_vm3, %v538_v57, %v542_v2  ;;  %v547_v48 = vsel %vm110_vm3, %v542_v2, %v538_v57  ;;  %v508_v57 = vsel %vm69_vm2, %v1751_v29, %v1737_v37  ;;  %v548_v37 = vsel %vm110_vm3, %v2458_v38, %v2459_v47 }
 0x1ae   :  { %v556_v11 = vrot.slane %v545_v28, %v1463_v7  ;;  %v560_v59 = vrot.slane %v547_v48, %v1463_v7  ;;  %v533_v29 = vadd.f32 %v529_v54, %v493_v50  ;;  %v528_v5 = vrot.slane %v508_v57, %v1463_v7 }
 0x1af   :  { %v568_v2 = vrot.slane %v548_v37, %v1463_v7  ;;  %v535_v9 = vadd.f32 %v531_v13, %v495_v36  ;;  %v1419_v54 = vmov 15   ;;  %v2463_v13 = vld [vmem:[#allocation11_spill] sm:$0xff] }
 0x1b0   :  { %v551_v3 = vpop.permute.xlu0 %550  ;;  %v532_v19 = vmul.f32 %v528_v5, %v2457_v49 }
 0x1b1   :  { %v569_v4 = vmul.f32 %v556_v11, %v551_v3  ;;  %v570_v32 = vmul.f32 %v560_v59, %v551_v3  ;;  %v571_v39 = vmul.f32 %v564_v52, %v551_v3  ;;  %v572_v24 = vmul.f32 %v568_v2, %v551_v3 }
 0x1b2   :  { %v536_v14 = vadd.f32 %v532_v19, %v496_v15 }
 0x1b3   :  { %v573_v8 = vadd.f32 %v569_v4, %v533_v29  ;;  %v574_v25 = vadd.f32 %v570_v32, %v534_v31  ;;  %v575_v40 = vadd.f32 %v571_v39, %v535_v9  ;;  %v2464_v39 = vld [vmem:[#allocation12_spill] sm:$0xff] }
 0x1b4   :  { %v576_v16 = vadd.f32 %v572_v24, %v536_v14  ;;  %v2466_v14 = vld [vmem:[#allocation14_spill] sm:$0xff] }
 0x1de   :  { %v630_v21 = vpop.permute.xlu0 %629  ;;  %v628_v0 = vpop.permute.xlu1 %627 }
 0x1df   :  { %v639_v51 = vsel %vm205_vm0, %v628_v0, %v630_v21 }
 0x1e0   :  { %v2012_v1 = vadd.f32 %v639_v51, %v573_v8 }
 0x1e2   :  { %v634_v43 = vpop.permute.xlu0 %633  ;;  %v632_v28 = vpop.permute.xlu1 %631 }
 0x1e3   :  { %v640_v45 = vsel %vm205_vm0, %v630_v21, %v632_v28 }
 0x1e4   :  { %v648_v34 = vadd.f32 %v640_v45, %v574_v25 }
 0x1e6   :  { %v638_v30 = vpop.permute.xlu0 %637  ;;  %v636_v60 = vpop.permute.xlu1 %635 }
 0x1e7   :  { %v641_v61 = vsel %vm205_vm0, %v634_v43, %v636_v60  ;;  %v642_v10 = vsel %vm205_vm0, %v636_v60, %v638_v30 }
 0x1e8   :  { %v649_v35 = vadd.f32 %v641_v61, %v575_v40  ;;  %v650_v11 = vadd.f32 %v642_v10, %v576_v16 }
 0x1ea   :  { %v654_v23 = vpop.permute.xlu0 %653  ;;  %v652_v48 = vpop.permute.xlu1 %651 }
 0x1eb   :  { %v663_v3 = vsel %vm205_vm0, %v652_v48, %v654_v23  ;;  %v2467_v48 = vld [vmem:[#allocation15_spill] sm:$0xff] }
 0x1ec   :  { %671 = vrot.lane.b32.xlu1 %v663_v3, %s1402_s19 }
 0x1ee   :  { %v656_v22 = vpop.permute.xlu1 %655  ;;  %v658_v26 = vpop.permute.xlu0 %657 }
 0x1ef   :  { %v664_v53 = vsel %vm205_vm0, %v654_v23, %v656_v22  ;;  %v2468_v22 = vld [vmem:[#allocation16_spill] sm:$0xff] }
 0x1f0   :  { %675 = vrot.lane.b32.xlu1 %v664_v53, %s1402_s19 }
 0x1f2   :  { %v660_v50 = vpop.permute.xlu1 %659  ;;  %v662_v46 = vpop.permute.xlu0 %661 }
 0x1f3   :  { %v665_v17 = vsel %vm205_vm0, %v658_v26, %v660_v50  ;;  %v666_v49 = vsel %vm205_vm0, %v660_v50, %v662_v46  ;;  %v1421_v50 = vmov 17  }
 0x1f4   :  { %684 = vperm.xlu1 %1385, %v2462_v56   ;;  %673 = vrot.lane.b32.xlu0 %v665_v17, %s1402_s19 }
 0x1f8   :  { %713 = vrot.lane.b32.xlu1 %v665_v17, %s1404_s20  ;;  %677 = vrot.lane.b32.xlu0 %v666_v49, %s1402_s19 }
 0x1f9   :  { %1387 = vset.pattern.permute.xlu1 %v1419_v54 }
 0x1fc   :  { %717 = vrot.lane.b32.xlu1 %v666_v49, %s1404_s20  ;;  %711 = vrot.lane.b32.xlu0 %v663_v3, %s1404_s20 }
 0x200   :  { %752 = vperm.xlu1 %1387, %v2462_v56   ;;  %715 = vrot.lane.b32.xlu0 %v664_v53, %s1404_s20  ;;  %v1420_v53 = vmov 16  }
 0x204   :  { %724 = vperm.xlu0 %1386, %v2462_v56   ;;  %1388 = vset.pattern.permute.xlu1 %v1420_v53 }
 0x208   :  { %1391 = vset.pattern.permute.xlu0 %v1421_v50 }
 0x25e   :  { %v672_v57 = vpop.permute.xlu1 %671 }
 0x262   :  { %v676_v55 = vpop.permute.xlu1 %675 }
 0x263   :  { %v679_v58 = vsel %vm69_vm2, %v672_v57, %v676_v55  ;;  %v681_v59 = vsel %vm69_vm2, %v676_v55, %v672_v57 }
 0x264   :  { %v690_v12 = vrot.slane %v679_v58, %v1463_v7  ;;  %v694_v62 = vrot.slane %v681_v59, %v1463_v7 }
 0x266   :  { %v674_v4 = vpop.permute.xlu0 %673 }
 0x26a   :  { %v678_v38 = vpop.permute.xlu0 %677 }
 0x26b   :  { %v680_v47 = vsel %vm69_vm2, %v674_v4, %v678_v38  ;;  %v682_v63 = vsel %vm69_vm2, %v678_v38, %v674_v4 }
 0x26c   :  { %v698_v29 = vrot.slane %v680_v47, %v1463_v7  ;;  %v702_v41 = vrot.slane %v682_v63, %v1463_v7 }
 0x26e   :  { %v712_v42 = vpop.permute.xlu0 %711 }
 0x272   :  { %v716_v37 = vpop.permute.xlu0 %715 }
 0x273   :  { %v719_v27 = vsel %vm110_vm3, %v712_v42, %v716_v37  ;;  %v721_v18 = vsel %vm110_vm3, %v716_v37, %v712_v42  ;;  %v685_v5 = vpop.permute.xlu1 %684 }
 0x274   :  { %v703_v6 = vmul.f32 %v690_v12, %v685_v5  ;;  %v704_v20 = vmul.f32 %v694_v62, %v685_v5  ;;  %v705_v44 = vmul.f32 %v698_v29, %v685_v5  ;;  %v706_v32 = vmul.f32 %v702_v41, %v685_v5 }
 0x275   :  { %v730_v43 = vrot.slane %v719_v27, %v1463_v7 }
 0x276   :  { %v707_v21 = vadd.f32 %v703_v6, %v2012_v1  ;;  %v708_v0 = vadd.f32 %v704_v20, %v648_v34  ;;  %v709_v52 = vadd.f32 %v705_v44, %v649_v35  ;;  %v710_v2 = vadd.f32 %v706_v32, %v650_v11  ;;  %v2465_v34 = vld [vmem:[#allocation13_spill] sm:$0xff]  ;;  %v2103_v20 = vld [vmem:[%s2412_s1] sm:$0x3f] }
 0x277   :  { %v714_v8 = vpop.permute.xlu1 %713  ;;  %v734_v1 = vrot.slane %v721_v18, %v1463_v7  ;;  %v1422_v32 = vmov 21  }
 0x27b   :  { %v718_v51 = vpop.permute.xlu1 %717 }
 0x27c   :  { %v720_v36 = vsel %vm110_vm3, %v714_v8, %v718_v51  ;;  %v722_v15 = vsel %vm110_vm3, %v718_v51, %v714_v8  ;;  %v2469_v8 = vld [vmem:[#allocation4_spill] sm:$0xff]  ;;  %v1423_v51 = vmov 24  }
 0x27d   :  { %v738_v25 = vrot.slane %v720_v36, %v1463_v7  ;;  %v742_v28 = vrot.slane %v722_v15, %v1463_v7  ;;  %v2470_v36 = vld [vmem:[#allocation3_spill] sm:$0xff] }
 0x27f   :  { %v753_v31 = vpop.permute.xlu1 %752 }
 0x280   :  { %v756_v19 = vmul.f32 %v753_v31, %v2463_v13  ;;  %v755_v24 = vmul.f32 %v753_v31, %v2464_v39  ;;  %v758_v9 = vmul.f32 %v753_v31, %v2465_v34  ;;  %v757_v30 = vmul.f32 %v753_v31, %v2466_v14 }
 0x281   :  { %v760_v3 = vmul.f32 %v753_v31, %v2467_v48  ;;  %v759_v26 = vmul.f32 %v753_v31, %v2468_v22 }
 0x282   :  { %769 = vrot.lane.b32.xlu0 %v756_v19, %s1409_s26  ;;  %767 = vrot.lane.b32.xlu1 %v755_v24, %s1409_s26  ;;  %v1337_v24 = vld [vmem:[%s2413_s0 + $0x2] ss:$4 sm:$0x3] }
 0x283   :  { %v725_v45 = vpop.permute.xlu0 %724 }
 0x284   :  { %v743_v40 = vmul.f32 %v730_v43, %v725_v45  ;;  %v744_v16 = vmul.f32 %v734_v1, %v725_v45  ;;  %v745_v60 = vmul.f32 %v738_v25, %v725_v45  ;;  %v746_v61 = vmul.f32 %v742_v28, %v725_v45  ;;  %v1338_v1 = vld [vmem:[%s2413_s0 + $0xe] ss:$4 sm:$0x3] }
 0x285   :  { %v2168_v43 = vrot.slane %v1337_v24, %v1463_v7  ;;  %v2177_v25 = vrot.slane %v1337_v24, %v2470_v36  ;;  %v2180_v28 = vrot.slane %v1338_v1, %v1463_v7  ;;  %v1425_v45 = vmov 19  }
 0x286   :  { %773 = vrot.lane.b32.xlu0 %v758_v9, %s1409_s26  ;;  %771 = vrot.lane.b32.xlu1 %v757_v30, %s1409_s26  ;;  %v747_v10 = vadd.f32 %v743_v40, %v707_v21  ;;  %v748_v35 = vadd.f32 %v744_v16, %v708_v0  ;;  %v749_v11 = vadd.f32 %v745_v60, %v709_v52  ;;  %v1339_v21 = vld [vmem:[%s2413_s0 + $0x2] ss:$4 sm:$0x7]  ;;  %v1426_v9 = vmov 20  }
 0x287   :  { %v750_v23 = vadd.f32 %v746_v61, %v710_v2  ;;  %v2116_v0 = vrot.slane %v1339_v21, %v1463_v7  ;;  %v2122_v52 = vrot.slane %v1339_v21, %v2469_v8  ;;  %v1340_v2 = vld [vmem:[%s2413_s0 + $0xe] ss:$4 sm:$0x7]  ;;  %v2134_v31 = vrot.slane %v1339_v21, %v2470_v36 }
 0x288   :  { %v2131_v15 = vrot.slane %v1340_v2, %v2470_v36  ;;  %v2147_v19 = vrot.slane %v1340_v2, %v2469_v8  ;;  %v1428_v30 = vmov 22   ;;  %v1429_v40 = vmov 26  }
 0x289   :  { %v1430_v16 = vmov 25  }
 0x28a   :  { %777 = vrot.lane.b32.xlu0 %v760_v3, %s1409_s26  ;;  %775 = vrot.lane.b32.xlu1 %v759_v26, %s1409_s26 }
 0x28e   :  { %793 = vrot.lane.b32.xlu0 %v2463_v13, %s1409_s26  ;;  %791 = vrot.lane.b32.xlu1 %v2464_v39, %s1409_s26  ;;  %v2141_v13 = vrot.slane %v1340_v2, %v1463_v7  ;;  %v1424_v39 = vmov 18  }
 0x292   :  { %795 = vrot.lane.b32.xlu1 %v2466_v14, %s1409_s26  ;;  %797 = vrot.lane.b32.xlu0 %v2465_v34, %s1409_s26  ;;  %v2187_v34 = vrot.slane %v1338_v1, %v2470_v36  ;;  %v1427_v14 = vmov 23  }
 0x296   :  { %799 = vrot.lane.b32.xlu1 %v2468_v22, %s1409_s26  ;;  %801 = vrot.lane.b32.xlu0 %v2467_v48, %s1409_s26 }
 0x2f4   :  { %v770_v46 = vpop.permute.xlu0 %769  ;;  %v768_v17 = vpop.permute.xlu1 %767 }
 0x2f5   :  { %v779_v56 = vsel %vm346_vm1, %v768_v17, %v770_v46 }
 0x2f6   :  { %v2084_v49 = vadd.f32 %v779_v56, %v747_v10 }
 0x2f8   :  { %v774_v54 = vpop.permute.xlu0 %773  ;;  %v772_v57 = vpop.permute.xlu1 %771 }
 0x2f9   :  { %v780_v55 = vsel %vm346_vm1, %v770_v46, %v772_v57 }
 0x2fa   :  { %v2087_v58 = vadd.f32 %v780_v55, %v748_v35 }
 0x2fc   :  { %v778_v59 = vpop.permute.xlu0 %777  ;;  %v776_v4 = vpop.permute.xlu1 %775 }
 0x2fd   :  { %v781_v38 = vsel %vm346_vm1, %v774_v54, %v776_v4  ;;  %v782_v47 = vsel %vm346_vm1, %v776_v4, %v778_v59 }
 0x2fe   :  { %v2091_v63 = vadd.f32 %v781_v38, %v749_v11  ;;  %v2093_v42 = vadd.f32 %v782_v47, %v750_v23 }
 0x300   :  { %v794_v12 = vpop.permute.xlu0 %793  ;;  %v792_v62 = vpop.permute.xlu1 %791 }
 0x301   :  { %v803_v37 = vsel %vm346_vm1, %v792_v62, %v794_v12 }
 0x302   :  { %811 = vrot.lane.b32.xlu1 %v803_v37, %s1402_s19 }
 0x304   :  { %v796_v29 = vpop.permute.xlu1 %795  ;;  %v798_v41 = vpop.permute.xlu0 %797 }
 0x305   :  { %v804_v27 = vsel %vm346_vm1, %v794_v12, %v796_v29 }
 0x306   :  { %815 = vrot.lane.b32.xlu1 %v804_v27, %s1402_s19 }
 0x308   :  { %v800_v18 = vpop.permute.xlu1 %799  ;;  %v802_v5 = vpop.permute.xlu0 %801 }
 0x309   :  { %v805_v6 = vsel %vm346_vm1, %v798_v41, %v800_v18  ;;  %v806_v44 = vsel %vm346_vm1, %v800_v18, %v802_v5 }
 0x30a   :  { %824 = vperm.xlu1 %1388, %v2103_v20   ;;  %813 = vrot.lane.b32.xlu0 %v805_v6, %s1402_s19 }
 0x30e   :  { %853 = vrot.lane.b32.xlu1 %v805_v6, %s1404_s20  ;;  %817 = vrot.lane.b32.xlu0 %v806_v44, %s1402_s19 }
 0x30f   :  { %1389 = vset.pattern.permute.xlu1 %v1422_v32 }
 0x312   :  { %1012 = vperm.xlu1 %1389, %v2103_v20   ;;  %851 = vrot.lane.b32.xlu0 %v803_v37, %s1404_s20 }
 0x316   :  { %1083 = vrot.lane.b32.xlu1 %v2116_v0, %s1406_s25  ;;  %855 = vrot.lane.b32.xlu0 %v804_v27, %s1404_s20 }
 0x317   :  { %1390 = vset.pattern.permute.xlu1 %v1423_v51 }
 0x31a   :  { %1087 = vrot.lane.b32.xlu1 %v2122_v52, %s1406_s25  ;;  %857 = vrot.lane.b32.xlu0 %v806_v44, %s1404_s20 }
 0x31e   :  { %1091 = vrot.lane.b32.xlu1 %v2131_v15, %s1406_s25  ;;  %1085 = vrot.lane.b32.xlu0 %v2134_v31, %s1406_s25 }
 0x322   :  { %1184 = vperm.xlu1 %1390, %v2103_v20   ;;  %1089 = vrot.lane.b32.xlu0 %v2141_v13, %s1406_s25 }
 0x326   :  { %1225 = vrot.lane.b32.xlu1 %v2134_v31, %s1409_s26  ;;  %1093 = vrot.lane.b32.xlu0 %v2147_v19, %s1406_s25 }
 0x327   :  { %1392 = vset.pattern.permute.xlu1 %v1424_v39 }
 0x32a   :  { %1229 = vrot.lane.b32.xlu1 %v2141_v13, %s1409_s26  ;;  %1223 = vrot.lane.b32.xlu0 %v2116_v0, %s1409_s26 }
 0x32e   :  { %1233 = vrot.lane.b32.xlu1 %v2147_v19, %s1409_s26  ;;  %1227 = vrot.lane.b32.xlu0 %v2122_v52, %s1409_s26 }
 0x332   :  { %896 = vperm.xlu1 %1392, %v2103_v20   ;;  %1231 = vrot.lane.b32.xlu0 %v2131_v15, %s1409_s26 }
 0x336   :  { %929 = vrot.lane.b32.xlu1 %v2168_v43, %s1402_s19  ;;  %864 = vperm.xlu0 %1391, %v2103_v20  }
 0x337   :  { %1393 = vset.pattern.permute.xlu1 %v1425_v45 }
 0x33a   :  { %933 = vrot.lane.b32.xlu1 %v2177_v25, %s1402_s19  ;;  %931 = vrot.lane.b32.xlu0 %v2180_v28, %s1402_s19 }
 0x33b   :  { %1394 = vset.pattern.permute.xlu0 %v1426_v9 }
 0x33e   :  { %942 = vperm.xlu1 %1393, %v2103_v20   ;;  %935 = vrot.lane.b32.xlu0 %v2187_v34, %s1402_s19 }
 0x342   :  { %969 = vrot.lane.b32.xlu0 %v2168_v43, %s1404_s20  ;;  %971 = vrot.lane.b32.xlu1 %v2180_v28, %s1404_s20 }
 0x343   :  { %1396 = vset.pattern.permute.xlu1 %v1427_v14 }
 0x346   :  { %982 = vperm.xlu0 %1394, %v2103_v20   ;;  %973 = vrot.lane.b32.xlu1 %v2177_v25, %s1404_s20 }
 0x34a   :  { %975 = vrot.lane.b32.xlu1 %v2187_v34, %s1404_s20  ;;  %1395 = vset.pattern.permute.xlu0 %v1428_v30 }
 0x34b   :  { %1116 = vperm.xlu0 %1395, %v2103_v20  }
 0x34e   :  { %1156 = vperm.xlu1 %1396, %v2103_v20  }
 0x34f   :  { %1398 = vset.pattern.permute.xlu0 %v1429_v40 }
 0x352   :  { %1397 = vset.pattern.permute.xlu1 %v1430_v16 }
 0x374   :  { %v812_v60 = vpop.permute.xlu1 %811 }
 0x378   :  { %v816_v61 = vpop.permute.xlu1 %815 }
 0x379   :  { %v819_v10 = vsel %vm69_vm2, %v812_v60, %v816_v61  ;;  %v821_v35 = vsel %vm69_vm2, %v816_v61, %v812_v60 }
 0x37a   :  { %v830_v26 = vrot.slane %v819_v10, %v1463_v7  ;;  %v834_v53 = vrot.slane %v821_v35, %v1463_v7 }
 0x37c   :  { %v814_v11 = vpop.permute.xlu0 %813 }
 0x380   :  { %v818_v23 = vpop.permute.xlu0 %817 }
 0x381   :  { %v820_v48 = vsel %vm69_vm2, %v814_v11, %v818_v23  ;;  %v822_v3 = vsel %vm69_vm2, %v818_v23, %v814_v11 }
 0x382   :  { %v838_v46 = vrot.slane %v820_v48, %v1463_v7  ;;  %v842_v17 = vrot.slane %v822_v3, %v1463_v7 }
 0x384   :  { %v852_v22 = vpop.permute.xlu0 %851 }
 0x388   :  { %v856_v50 = vpop.permute.xlu0 %855 }
 0x389   :  { %v2217_v56 = vsel %vm110_vm3, %v852_v22, %v856_v50  ;;  %v2221_v54 = vsel %vm110_vm3, %v856_v50, %v852_v22  ;;  %v825_v57 = vpop.permute.xlu1 %824 }
 0x38a   :  { %v843_v55 = vmul.f32 %v830_v26, %v825_v57  ;;  %v844_v59 = vmul.f32 %v834_v53, %v825_v57  ;;  %v845_v4 = vmul.f32 %v838_v46, %v825_v57  ;;  %v846_v38 = vmul.f32 %v842_v17, %v825_v57 }
 0x38b   :  { %v870_v35 = vrot.slane %v2217_v56, %v1463_v7  ;;  %v874_v11 = vrot.slane %v2221_v54, %v1463_v7 }
 0x38c   :  { %v2224_v47 = vadd.f32 %v843_v55, %v2084_v49  ;;  %v2227_v12 = vadd.f32 %v844_v59, %v2087_v58  ;;  %v858_v62 = vpop.permute.xlu0 %857  ;;  %v2230_v37 = vadd.f32 %v845_v4, %v2091_v63  ;;  %v2233_v29 = vadd.f32 %v846_v38, %v2093_v42 }
 0x38d   :  { %v854_v41 = vpop.permute.xlu1 %853 }
 0x38e   :  { %v860_v27 = vsel %vm110_vm3, %v854_v41, %v858_v62  ;;  %v862_v18 = vsel %vm110_vm3, %v858_v62, %v854_v41 }
 0x38f   :  { %v878_v23 = vrot.slane %v860_v27, %v1463_v7  ;;  %v882_v48 = vrot.slane %v862_v18, %v1463_v7 }
 0x390   :  { %v1086_v49 = vpop.permute.xlu0 %1085 }
 0x391   :  { %v1013_v5 = vpop.permute.xlu1 %1012 }
 0x392   :  { %v1047_v21 = vmul.f32 %v2116_v0, %v1013_v5  ;;  %v1049_v36 = vmul.f32 %v2122_v52, %v1013_v5  ;;  %v1051_v45 = vmul.f32 %v2131_v15, %v1013_v5  ;;  %v1048_v9 = vmul.f32 %v2134_v31, %v1013_v5 }
 0x393   :  { %v1050_v30 = vmul.f32 %v2141_v13, %v1013_v5  ;;  %v1052_v60 = vmul.f32 %v2147_v19, %v1013_v5 }
 0x394   :  { %v1090_v44 = vpop.permute.xlu0 %1089 }
 0x395   :  { %v1084_v6 = vpop.permute.xlu1 %1083 }
 0x396   :  { %v1095_v58 = vsel %vm205_vm0, %v1084_v6, %v1086_v49 }
 0x397   :  { %1103 = vrot.lane.b32.xlu1 %v1095_v58, %s1402_s19 }
 0x398   :  { %v1094_v2 = vpop.permute.xlu0 %1093 }
 0x399   :  { %v1088_v63 = vpop.permute.xlu1 %1087 }
 0x39a   :  { %v1096_v32 = vsel %vm205_vm0, %v1086_v49, %v1088_v63 }
 0x39b   :  { %1107 = vrot.lane.b32.xlu1 %v1096_v32, %s1402_s19 }
 0x39c   :  { %v1224_v24 = vpop.permute.xlu0 %1223 }
 0x39d   :  { %v1092_v42 = vpop.permute.xlu1 %1091 }
 0x39e   :  { %v1097_v8 = vsel %vm205_vm0, %v1090_v44, %v1092_v42  ;;  %v1098_v39 = vsel %vm205_vm0, %v1092_v42, %v1094_v2 }
 0x39f   :  { %1059 = vrot.lane.b32.xlu1 %v1047_v21, %s1406_s25  ;;  %1105 = vrot.lane.b32.xlu0 %v1097_v8, %s1402_s19 }
 0x3a0   :  { %v1228_v40 = vpop.permute.xlu0 %1227 }
 0x3a1   :  { %v2247_v51 = vpop.permute.xlu1 %1184 }
 0x3a3   :  { %1063 = vrot.lane.b32.xlu1 %v1049_v36, %s1406_s25  ;;  %1109 = vrot.lane.b32.xlu0 %v1098_v39, %s1402_s19 }
 0x3a4   :  { %v1232_v61 = vpop.permute.xlu0 %1231 }
 0x3a5   :  { %v1226_v1 = vpop.permute.xlu1 %1225 }
 0x3a6   :  { %v2272_v3 = vsel %vm346_vm1, %v1224_v24, %v1226_v1 }
 0x3a7   :  { %1067 = vrot.lane.b32.xlu1 %v1051_v45, %s1406_s25  ;;  %1061 = vrot.lane.b32.xlu0 %v1048_v9, %s1406_s25  ;;  %v1188_v45 = vmul.f32 %v2247_v51, %v2134_v31 }
 0x3a9   :  { %v1230_v14 = vpop.permute.xlu1 %1229 }
 0x3aa   :  { %v2277_v55 = vsel %vm346_vm1, %v1230_v14, %v1232_v61 }
 0x3ab   :  { %1143 = vrot.lane.b32.xlu1 %v1095_v58, %s1404_s20  ;;  %1065 = vrot.lane.b32.xlu0 %v1050_v30, %s1406_s25 }
 0x3ad   :  { %v1234_v16 = vpop.permute.xlu1 %1233 }
 0x3af   :  { %1147 = vrot.lane.b32.xlu1 %v1096_v32, %s1404_s20  ;;  %1069 = vrot.lane.b32.xlu0 %v1052_v60, %s1406_s25  ;;  %v1190_v60 = vmul.f32 %v2247_v51, %v2141_v13  ;;  %v1191_v13 = vmul.f32 %v2247_v51, %v2131_v15 }
 0x3b1   :  { %v897_v10 = vpop.permute.xlu1 %896 }
 0x3b2   :  { %v921_v22 = vmul.f32 %v2168_v43, %v897_v10  ;;  %v922_v26 = vmul.f32 %v2177_v25, %v897_v10  ;;  %v923_v54 = vmul.f32 %v2180_v28, %v897_v10  ;;  %v924_v59 = vmul.f32 %v2187_v34, %v897_v10 }
 0x3b3   :  { %1256 = vperm.xlu1 %1397, %v2103_v20   ;;  %1145 = vrot.lane.b32.xlu0 %v1097_v8, %s1404_s20 }
 0x3b5   :  { %v865_v53 = vpop.permute.xlu0 %864  ;;  %v930_v50 = vpop.permute.xlu1 %929 }
 0x3b6   :  { %v883_v46 = vmul.f32 %v870_v35, %v865_v53  ;;  %v884_v17 = vmul.f32 %v874_v11, %v865_v53  ;;  %v885_v56 = vmul.f32 %v878_v23, %v865_v53  ;;  %v886_v57 = vmul.f32 %v882_v48, %v865_v53 }
 0x3b7   :  { %1149 = vrot.lane.b32.xlu0 %v1098_v39, %s1404_s20  ;;  %1243 = vrot.lane.b32.xlu1 %v2272_v3, %s1402_s19  ;;  %v1192_v48 = vmul.f32 %v2247_v51, %v2147_v19 }
 0x3b8   :  { %v887_v43 = vadd.f32 %v883_v46, %v2224_v47  ;;  %v888_v25 = vadd.f32 %v884_v17, %v2227_v12  ;;  %v889_v4 = vadd.f32 %v885_v56, %v2230_v37  ;;  %v890_v38 = vadd.f32 %v886_v57, %v2233_v29 }
 0x3b9   :  { %v932_v62 = vpop.permute.xlu0 %931  ;;  %v934_v41 = vpop.permute.xlu1 %933  ;;  %v1236_v37 = vsel %vm346_vm1, %v1226_v1, %v1228_v40  ;;  %v1238_v29 = vsel %vm346_vm1, %v1232_v61, %v1234_v16  ;;  %v1187_v1 = vmul.f32 %v2247_v51, %v2116_v0  ;;  %v1189_v16 = vmul.f32 %v2247_v51, %v2122_v52 }
 0x3ba   :  { %v937_v28 = vsel %vm69_vm2, %v930_v50, %v934_v41  ;;  %v939_v34 = vsel %vm69_vm2, %v934_v41, %v930_v50  ;;  %v925_v27 = vadd.f32 %v921_v22, %v887_v43  ;;  %v926_v18 = vadd.f32 %v922_v26, %v888_v25 }
 0x3bb   :  { %v948_v5 = vrot.slane %v937_v28, %v1463_v7  ;;  %v952_v47 = vrot.slane %v939_v34, %v1463_v7  ;;  %1296 = vperm.xlu0 %1398, %v2103_v20   ;;  %1245 = vrot.lane.b32.xlu1 %v2277_v55, %s1402_s19  ;;  %v927_v12 = vadd.f32 %v923_v54, %v889_v4 }
 0x3bc   :  { %v928_v49 = vadd.f32 %v924_v59, %v890_v38 }
 0x3bd   :  { %v936_v6 = vpop.permute.xlu0 %935  ;;  %v943_v58 = vpop.permute.xlu1 %942 }
 0x3be   :  { %v938_v44 = vsel %vm69_vm2, %v932_v62, %v936_v6  ;;  %v940_v63 = vsel %vm69_vm2, %v936_v6, %v932_v62  ;;  %v961_v32 = vmul.f32 %v948_v5, %v943_v58  ;;  %v962_v42 = vmul.f32 %v952_v47, %v943_v58 }
 0x3bf   :  { %v956_v20 = vrot.slane %v938_v44, %v1463_v7  ;;  %v960_v21 = vrot.slane %v940_v63, %v1463_v7  ;;  %1247 = vrot.lane.b32.xlu0 %v1236_v37, %s1402_s19  ;;  %1249 = vrot.lane.b32.xlu1 %v1238_v29, %s1402_s19 }
 0x3c0   :  { %v965_v8 = vadd.f32 %v961_v32, %v925_v27  ;;  %v966_v2 = vadd.f32 %v962_v42, %v926_v18 }
 0x3c1   :  { %v963_v36 = vmul.f32 %v956_v20, %v943_v58  ;;  %v964_v39 = vmul.f32 %v960_v21, %v943_v58  ;;  %v972_v24 = vpop.permute.xlu1 %971  ;;  %v970_v9 = vpop.permute.xlu0 %969 }
 0x3c3   :  { %1199 = vrot.lane.b32.xlu0 %v1187_v1, %s1409_s26  ;;  %1201 = vrot.lane.b32.xlu1 %v1188_v45, %s1409_s26  ;;  %v967_v14 = vadd.f32 %v963_v36, %v927_v12  ;;  %v968_v30 = vadd.f32 %v964_v39, %v928_v49 }
 0x3c5   :  { %v974_v40 = vpop.permute.xlu1 %973  ;;  %v983_v61 = vpop.permute.xlu0 %982 }
 0x3c6   :  { %v977_v0 = vsel %vm110_vm3, %v970_v9, %v974_v40  ;;  %v979_v31 = vsel %vm110_vm3, %v974_v40, %v970_v9 }
 0x3c7   :  { %v988_v10 = vrot.slane %v977_v0, %v1463_v7  ;;  %v992_v35 = vrot.slane %v979_v31, %v1463_v7  ;;  %1203 = vrot.lane.b32.xlu0 %v1189_v16, %s1409_s26  ;;  %1205 = vrot.lane.b32.xlu1 %v1190_v60, %s1409_s26 }
 0x3c9   :  { %v1001_v11 = vmul.f32 %v988_v10, %v983_v61  ;;  %v1002_v52 = vmul.f32 %v992_v35, %v983_v61  ;;  %v976_v23 = vpop.permute.xlu1 %975 }
 0x3ca   :  { %v978_v22 = vsel %vm110_vm3, %v972_v24, %v976_v23  ;;  %v980_v26 = vsel %vm110_vm3, %v976_v23, %v972_v24  ;;  %v1117_v59 = vpop.permute.xlu0 %1116 }
 0x3cb   :  { %v996_v53 = vrot.slane %v978_v22, %v1463_v7  ;;  %v1000_v50 = vrot.slane %v980_v26, %v1463_v7  ;;  %1207 = vrot.lane.b32.xlu0 %v1191_v13, %s1409_s26  ;;  %1209 = vrot.lane.b32.xlu1 %v1192_v48, %s1409_s26  ;;  %v1005_v46 = vadd.f32 %v1001_v11, %v965_v8 }
 0x3cc   :  { %v1006_v17 = vadd.f32 %v1002_v52, %v966_v2 }
 0x3cd   :  { %v1003_v15 = vmul.f32 %v996_v53, %v983_v61  ;;  %v1004_v56 = vmul.f32 %v1000_v50, %v983_v61  ;;  %v1157_v57 = vpop.permute.xlu1 %1156 }
 0x3cf   :  { %1283 = vrot.lane.b32.xlu0 %v2272_v3, %s1404_s20  ;;  %1285 = vrot.lane.b32.xlu1 %v2277_v55, %s1404_s20  ;;  %v1007_v19 = vadd.f32 %v1003_v15, %v967_v14  ;;  %v1008_v51 = vadd.f32 %v1004_v56, %v968_v30 }
 0x3d3   :  { %1287 = vrot.lane.b32.xlu0 %v1236_v37, %s1404_s20  ;;  %1289 = vrot.lane.b32.xlu1 %v1238_v29, %s1404_s20 }
 0x409   :  { %v1104_v54 = vpop.permute.xlu1 %1103 }
 0x40d   :  { %v1108_v43 = vpop.permute.xlu1 %1107 }
 0x40e   :  { %v1111_v38 = vsel %vm69_vm2, %v1104_v54, %v1108_v43  ;;  %v1113_v3 = vsel %vm69_vm2, %v1108_v43, %v1104_v54 }
 0x40f   :  { %v1122_v41 = vrot.slane %v1111_v38, %v1463_v7  ;;  %v1126_v28 = vrot.slane %v1113_v3, %v1463_v7 }
 0x411   :  { %v1106_v25 = vpop.permute.xlu0 %1105  ;;  %v1060_v4 = vpop.permute.xlu1 %1059  ;;  %v1135_v5 = vmul.f32 %v1122_v41, %v1117_v59  ;;  %v1136_v37 = vmul.f32 %v1126_v28, %v1117_v59 }
 0x415   :  { %v1110_v62 = vpop.permute.xlu0 %1109  ;;  %v1064_v55 = vpop.permute.xlu1 %1063 }
 0x416   :  { %v1112_v34 = vsel %vm69_vm2, %v1106_v25, %v1110_v62  ;;  %v1114_v58 = vsel %vm69_vm2, %v1110_v62, %v1106_v25 }
 0x417   :  { %v1130_v29 = vrot.slane %v1112_v34, %v1463_v7  ;;  %v1134_v21 = vrot.slane %v1114_v58, %v1463_v7 }
 0x419   :  { %v1062_v27 = vpop.permute.xlu0 %1061  ;;  %v1068_v18 = vpop.permute.xlu1 %1067  ;;  %v1137_v8 = vmul.f32 %v1130_v29, %v1117_v59  ;;  %v1138_v14 = vmul.f32 %v1134_v21, %v1117_v59 }
 0x41a   :  { %v1071_v47 = vsel %vm205_vm0, %v1060_v4, %v1062_v27  ;;  %v1072_v12 = vsel %vm205_vm0, %v1062_v27, %v1064_v55 }
 0x41b   :  { %v1079_v49 = vadd.f32 %v1071_v47, %v1005_v46  ;;  %v1080_v6 = vadd.f32 %v1072_v12, %v1006_v17 }
 0x41d   :  { %v1139_v44 = vadd.f32 %v1135_v5, %v1079_v49  ;;  %v1140_v63 = vadd.f32 %v1136_v37, %v1080_v6  ;;  %v1066_v32 = vpop.permute.xlu0 %1065  ;;  %v1144_v42 = vpop.permute.xlu1 %1143 }
 0x41e   :  { %v1073_v20 = vsel %vm205_vm0, %v1066_v32, %v1068_v18 }
 0x41f   :  { %v1081_v2 = vadd.f32 %v1073_v20, %v1007_v19 }
 0x421   :  { %v1141_v36 = vadd.f32 %v1137_v8, %v1081_v2  ;;  %v1070_v39 = vpop.permute.xlu0 %1069  ;;  %v1148_v24 = vpop.permute.xlu1 %1147 }
 0x422   :  { %v1074_v1 = vsel %vm205_vm0, %v1068_v18, %v1070_v39  ;;  %v1151_v45 = vsel %vm110_vm3, %v1144_v42, %v1148_v24  ;;  %v1153_v9 = vsel %vm110_vm3, %v1148_v24, %v1144_v42 }
 0x423   :  { %v1082_v30 = vadd.f32 %v1074_v1, %v1008_v51  ;;  %v1162_v40 = vrot.slane %v1151_v45, %v1463_v7  ;;  %v1166_v16 = vrot.slane %v1153_v9, %v1463_v7 }
 0x425   :  { %v1142_v60 = vadd.f32 %v1138_v14, %v1082_v30  ;;  %v1175_v0 = vmul.f32 %v1162_v40, %v1157_v57  ;;  %v1176_v31 = vmul.f32 %v1166_v16, %v1157_v57  ;;  %v1146_v61 = vpop.permute.xlu0 %1145 }
 0x427   :  { %v1179_v10 = vadd.f32 %v1175_v0, %v1139_v44  ;;  %v1180_v35 = vadd.f32 %v1176_v31, %v1140_v63 }
 0x429   :  { %v1150_v11 = vpop.permute.xlu0 %1149 }
 0x42a   :  { %v1152_v52 = vsel %vm110_vm3, %v1146_v61, %v1150_v11  ;;  %v1154_v23 = vsel %vm110_vm3, %v1150_v11, %v1146_v61 }
 0x42b   :  { %v1170_v13 = vrot.slane %v1152_v52, %v1463_v7  ;;  %v1174_v48 = vrot.slane %v1154_v23, %v1463_v7 }
 0x42d   :  { %v1177_v22 = vmul.f32 %v1170_v13, %v1157_v57  ;;  %v1178_v26 = vmul.f32 %v1174_v48, %v1157_v57 }
 0x42f   :  { %v1181_v53 = vadd.f32 %v1177_v22, %v1141_v36  ;;  %v1182_v50 = vadd.f32 %v1178_v26, %v1142_v60 }
 0x432   :  { %v1257_v46 = vpop.permute.xlu1 %1256 }
 0x436   :  { %v1244_v17 = vpop.permute.xlu1 %1243 }
 0x43a   :  { %v1297_v15 = vpop.permute.xlu0 %1296  ;;  %v1246_v56 = vpop.permute.xlu1 %1245 }
 0x43e   :  { %v1248_v19 = vpop.permute.xlu0 %1247  ;;  %v1250_v51 = vpop.permute.xlu1 %1249 }
 0x43f   :  { %v1251_v54 = vsel %vm69_vm2, %v1244_v17, %v1248_v19  ;;  %v1253_v43 = vsel %vm69_vm2, %v1248_v19, %v1244_v17  ;;  %v1252_v55 = vsel %vm69_vm2, %v1246_v56, %v1250_v51  ;;  %v1254_v41 = vsel %vm69_vm2, %v1250_v51, %v1246_v56 }
 0x440   :  { %v1262_v59 = vrot.slane %v1251_v54, %v1463_v7  ;;  %v1266_v38 = vrot.slane %v1253_v43, %v1463_v7  ;;  %v1270_v47 = vrot.slane %v1252_v55, %v1463_v7  ;;  %v1274_v12 = vrot.slane %v1254_v41, %v1463_v7 }
 0x442   :  { %v1200_v25 = vpop.permute.xlu0 %1199  ;;  %v1202_v4 = vpop.permute.xlu1 %1201  ;;  %v1275_v3 = vmul.f32 %v1262_v59, %v1257_v46  ;;  %v1276_v5 = vmul.f32 %v1266_v38, %v1257_v46  ;;  %v1277_v63 = vmul.f32 %v1270_v47, %v1257_v46  ;;  %v1278_v32 = vmul.f32 %v1274_v12, %v1257_v46 }
 0x443   :  { %v1211_v57 = vsel %vm346_vm1, %v1200_v25, %v1202_v4 }
 0x444   :  { %v1219_v62 = vadd.f32 %v1211_v57, %v1179_v10 }
 0x446   :  { %v1279_v28 = vadd.f32 %v1275_v3, %v1219_v62  ;;  %v1204_v34 = vpop.permute.xlu0 %1203  ;;  %v1206_v27 = vpop.permute.xlu1 %1205 }
 0x447   :  { %v1212_v18 = vsel %vm346_vm1, %v1202_v4, %v1204_v34 }
 0x448   :  { %v1220_v37 = vadd.f32 %v1212_v18, %v1180_v35 }
 0x44a   :  { %v1280_v29 = vadd.f32 %v1276_v5, %v1220_v37  ;;  %v1208_v49 = vpop.permute.xlu0 %1207  ;;  %v1210_v6 = vpop.permute.xlu1 %1209 }
 0x44b   :  { %v1213_v58 = vsel %vm346_vm1, %v1206_v27, %v1208_v49  ;;  %v1214_v44 = vsel %vm346_vm1, %v1208_v49, %v1210_v6 }
 0x44c   :  { %v1221_v42 = vadd.f32 %v1213_v58, %v1181_v53  ;;  %v1222_v20 = vadd.f32 %v1214_v44, %v1182_v50 }
 0x44e   :  { %v1281_v21 = vadd.f32 %v1277_v63, %v1221_v42  ;;  %v1282_v8 = vadd.f32 %v1278_v32, %v1222_v20  ;;  %v1284_v2 = vpop.permute.xlu0 %1283  ;;  %v1286_v36 = vpop.permute.xlu1 %1285 }
 0x452   :  { %v1288_v39 = vpop.permute.xlu0 %1287  ;;  %v1290_v24 = vpop.permute.xlu1 %1289 }
 0x453   :  { %v1291_v1 = vsel %vm110_vm3, %v1284_v2, %v1288_v39  ;;  %v1293_v45 = vsel %vm110_vm3, %v1288_v39, %v1284_v2  ;;  %v1292_v9 = vsel %vm110_vm3, %v1286_v36, %v1290_v24  ;;  %v1294_v14 = vsel %vm110_vm3, %v1290_v24, %v1286_v36 }
 0x454   :  { %v1302_v30 = vrot.slane %v1291_v1, %v1463_v7  ;;  %v1306_v40 = vrot.slane %v1293_v45, %v1463_v7  ;;  %v1310_v16 = vrot.slane %v1292_v9, %v1463_v7  ;;  %v1314_v60 = vrot.slane %v1294_v14, %v1463_v7 }
 0x456   :  { %v1315_v0 = vmul.f32 %v1302_v30, %v1297_v15  ;;  %v1316_v31 = vmul.f32 %v1306_v40, %v1297_v15  ;;  %v1317_v61 = vmul.f32 %v1310_v16, %v1297_v15  ;;  %v1318_v10 = vmul.f32 %v1314_v60, %v1297_v15 }
 0x458   :  { %v1319_v35 = vadd.f32 %v1315_v0, %v1279_v28  ;;  %v1320_v11 = vadd.f32 %v1316_v31, %v1280_v29  ;;  %v1321_v52 = vadd.f32 %v1317_v61, %v1281_v21  ;;  %v1322_v23 = vadd.f32 %v1318_v10, %v1282_v8 }
 0x45a   :  { %1323 = vst [vmem:[%s2414_s3] sm:$0x3f] %v1319_v35  ;;  %1324 = vst [vmem:[%s2414_s3 + $0x8] sm:$0x3f] %v1320_v11 }
 0x45b   :  { %1325 = vst [vmem:[%s2414_s3 + $0x10] sm:$0x3f] %v1321_v52  ;;  %1326 = vst [vmem:[%s2414_s3 + $0x18] sm:$0x3f] %v1322_v23 }

</bundles_post_ra>
